<compile_context>
chip_gen: v7x
topology: tpu7x:2x2x1
jax: 0.10.0
libtpu: 0.0.40
codegen_flags: <defaults>
</compile_context>

<pallas_src>
import math

import jax
import jax.numpy as jnp
from jax import lax
from jax.experimental import pallas as pl
from jax.experimental.pallas import tpu as pltpu

# ----- synthetic model config (small) -----
B, S, D = 2, 8, 32          # batch (prompts), context length, transformer width
H = 4                       # attention heads
DH = D // H                 # head dim
FF = 4 * D                  # MLP hidden dim
E = 32                      # text_projection output dim
N_LAYERS = 2
EPS = 1e-5


def _layernorm(x, gamma, beta):
    mu = jnp.mean(x, axis=-1, keepdims=True)
    var = jnp.mean(jnp.square(x - mu), axis=-1, keepdims=True)
    return (x - mu) * lax.rsqrt(var + EPS) * gamma + beta


# ---------------- fused Pallas kernel (one prompt per grid step) ----------------

def text_encoder_kernel(
    eot_ref,                                     # SMEM [B] int32 (scalar prefetch)
    x_ref, pos_ref,
    ln1_g_ref, ln1_b_ref, wqkv_ref, bqkv_ref, wo_ref, bo_ref,
    ln2_g_ref, ln2_b_ref, w1_ref, b1_ref, w2_ref, b2_ref,
    lnf_g_ref, lnf_b_ref, proj_ref,
    o_ref,
):
    # x = prompt + positional_embedding ; stays resident (f32) for the whole fwd
    x = x_ref[0] + pos_ref[...]                                      # [S, D]

    # causal mask, built once, reused by every layer (diagonal is finite)
    row = lax.broadcasted_iota(jnp.int32, (S, S), 0)
    col = lax.broadcasted_iota(jnp.int32, (S, S), 1)
    mask = jnp.where(col <= row, jnp.float32(0.0), jnp.float32(-jnp.inf))

    for l in range(N_LAYERS):                    # static unroll; weights indexed by layer
        # ---- residual attention block: x = x + MHA(LN1(x)) ----
        h = _layernorm(x, ln1_g_ref[l], ln1_b_ref[l])
        # single [S, D] x [D, 3D] MXU push for Q,K,V (1/sqrt(DH) folded into Q cols)
        qkv = jnp.dot(h.astype(jnp.bfloat16), wqkv_ref[l],
                      preferred_element_type=jnp.float32) + bqkv_ref[l]   # [S, 3D]
        # head split in VALUE space (no scratch round-trip): [S, 3D] -> [H, S, DH]
        q3 = jnp.stack([qkv[:, hh * DH:(hh + 1) * DH] for hh in range(H)])
        k3 = jnp.stack([qkv[:, D + hh * DH:D + (hh + 1) * DH] for hh in range(H)])
        v3 = jnp.stack([qkv[:, 2 * D + hh * DH:2 * D + (hh + 1) * DH]
                        for hh in range(H)])
        # all heads in one batched einsum each (leading batch dim = head)
        s = jnp.einsum('hqd,hkd->hqk', q3.astype(jnp.bfloat16),
                       k3.astype(jnp.bfloat16),
                       preferred_element_type=jnp.float32) + mask     # [H, S, S]
        s = s - jnp.max(s, axis=-1, keepdims=True)
        p = jnp.exp(s)                                                # unnormalized
        denom = jnp.sum(p, axis=-1, keepdims=True)                    # [H, S, 1]
        o3 = jnp.einsum('hqk,hkd->hqd', p.astype(jnp.bfloat16),
                        v3.astype(jnp.bfloat16),
                        preferred_element_type=jnp.float32)           # [H, S, DH]
        # normalize AFTER P@V: one EUP reciprocal per (h, q) row
        o3 = o3 * pl.reciprocal(denom, approx=True)
        # head concat in VALUE space, then ONE output-projection matmul
        attn = jnp.concatenate([o3[hh] for hh in range(H)], axis=-1)  # [S, D]
        x = x + jnp.dot(attn.astype(jnp.bfloat16), wo_ref[l],
                        preferred_element_type=jnp.float32) + bo_ref[l]

        # ---- residual MLP block: x = x + MLP(LN2(x)), QuickGELU (f32) ----
        h = _layernorm(x, ln2_g_ref[l], ln2_b_ref[l])
        h1 = jnp.dot(h.astype(jnp.bfloat16), w1_ref[l],
                     preferred_element_type=jnp.float32) + b1_ref[l]
        h1 = h1 * jax.nn.sigmoid(1.702 * h1)
        mlp = jnp.dot(h1.astype(jnp.bfloat16), w2_ref[l],
                      preferred_element_type=jnp.float32) + b2_ref[l]
        x = x + mlp

    # ---- EOT select (before ln_final; LN is per-token so the order is equivalent),
    #      ln_final on just the selected row, then text_projection ----
    eot = eot_ref[pl.program_id(0)]                                   # scalar int32
    rowid = lax.broadcasted_iota(jnp.int32, (S, 1), 0)
    sel = jnp.sum(jnp.where(rowid == eot, x, jnp.float32(0.0)),
                  axis=0, keepdims=True)                              # [1, D]
    hf = _layernorm(sel, lnf_g_ref[...], lnf_b_ref[...])
    o_ref[0] = jnp.dot(hf.astype(jnp.bfloat16), proj_ref[...],
                       preferred_element_type=jnp.float32)            # [1, E]


# ---------------- host-side wrapper ----------------

def _const_spec(shape):
    """Full-array block, same block (0,0,...) for every grid step (weights)."""
    zeros = (0,) * len(shape)
    return pl.BlockSpec(shape, lambda *_, _z=zeros: _z)


def prepare_params(params):
    """Stack per-layer weights, fold the attention scale into the Q columns, and
    cast matmul weights to bf16 (biases / LN params stay f32)."""
    scale = 1.0 / math.sqrt(DH)

    def stack(name):
        return jnp.stack([lyr[name] for lyr in params["layers"]])

    wqkv = stack("wqkv")                                              # [L, D, 3D]
    bqkv = stack("bqkv")                                              # [L, 1, 3D]
    qscale = jnp.concatenate([jnp.full((1, 1, D), scale, jnp.float32),
                              jnp.ones((1, 1, 2 * D), jnp.float32)], axis=-1)
    wqkv = wqkv * qscale
    bqkv = bqkv * qscale

    return {
        "pos": params["pos"],                                         # [S, D] f32
        "ln1_g": stack("ln1_g"), "ln1_b": stack("ln1_b"),
        "wqkv": wqkv.astype(jnp.bfloat16), "bqkv": bqkv,
        "wo": stack("wo").astype(jnp.bfloat16), "bo": stack("bo"),
        "ln2_g": stack("ln2_g"), "ln2_b": stack("ln2_b"),
        "w1": stack("w1").astype(jnp.bfloat16), "b1": stack("b1"),
        "w2": stack("w2").astype(jnp.bfloat16), "b2": stack("b2"),
        "lnf_g": params["lnf_g"], "lnf_b": params["lnf_b"],
        "proj": params["proj"].astype(jnp.bfloat16),
    }


def text_encoder_forward(prompts, tokenized_prompts, params):
    kp = prepare_params(params)
    eot = jnp.argmax(tokenized_prompts, axis=-1).astype(jnp.int32)    # [B] -> SMEM

    grid_spec = pltpu.PrefetchScalarGridSpec(
        num_scalar_prefetch=1,                   # eot indices -> SMEM
        grid=(B,),                               # one prompt per grid step
        in_specs=[
            pl.BlockSpec((1, S, D), lambda b, eot_ref: (b, 0, 0)),    # prompts
            _const_spec((S, D)),                                      # pos
            _const_spec((N_LAYERS, 1, D)),       # ln1_g
            _const_spec((N_LAYERS, 1, D)),       # ln1_b
            _const_spec((N_LAYERS, D, 3 * D)),   # wqkv (bf16)
            _const_spec((N_LAYERS, 1, 3 * D)),   # bqkv
            _const_spec((N_LAYERS, D, D)),       # wo (bf16)
            _const_spec((N_LAYERS, 1, D)),       # bo
            _const_spec((N_LAYERS, 1, D)),       # ln2_g
            _const_spec((N_LAYERS, 1, D)),       # ln2_b
            _const_spec((N_LAYERS, D, FF)),      # w1 (bf16)
            _const_spec((N_LAYERS, 1, FF)),      # b1
            _const_spec((N_LAYERS, FF, D)),      # w2 (bf16)
            _const_spec((N_LAYERS, 1, D)),       # b2
            _const_spec((1, D)),                 # lnf_g
            _const_spec((1, D)),                 # lnf_b
            _const_spec((D, E)),                 # proj (bf16)
        ],
        out_specs=pl.BlockSpec((1, 1, E), lambda b, eot_ref: (b, 0, 0)),
    )

    out = pl.pallas_call(
        text_encoder_kernel,
        out_shape=jax.ShapeDtypeStruct((B, 1, E), jnp.float32),
        grid_spec=grid_spec,
        compiler_params=pltpu.CompilerParams(
            dimension_semantics=("parallel",),   # shard prompts across v7x's 2 TCs
            vmem_limit_bytes=32 * 1024 * 1024),
    )(eot, prompts, kp["pos"],
      kp["ln1_g"], kp["ln1_b"], kp["wqkv"], kp["bqkv"], kp["wo"], kp["bo"],
      kp["ln2_g"], kp["ln2_b"], kp["w1"], kp["b1"], kp["w2"], kp["b2"],
      kp["lnf_g"], kp["lnf_b"], kp["proj"])
    return out.reshape(B, E)


# ---------------- deterministic synthetic parameters ----------------

def init_params(key):
    ks = iter(jax.random.split(key, 8 + 12 * N_LAYERS))

    def nrm(shape, scale=0.02):
        return (scale * jax.random.normal(next(ks), shape)).astype(jnp.float32)

    params = {
        "pos": nrm((S, D), 0.01),
        "lnf_g": (1.0 + nrm((1, D), 0.05)).astype(jnp.float32),
        "lnf_b": nrm((1, D), 0.05),
        "proj": nrm((D, E), D ** -0.5),
        "layers": [],
    }
    for _ in range(N_LAYERS):
        params["layers"].append({
            "ln1_g": (1.0 + nrm((1, D), 0.05)).astype(jnp.float32),
            "ln1_b": nrm((1, D), 0.05),
            "wqkv": nrm((D, 3 * D)),
            "bqkv": nrm((1, 3 * D)),
            "wo": nrm((D, D)),
            "bo": nrm((1, D)),
            "ln2_g": (1.0 + nrm((1, D), 0.05)).astype(jnp.float32),
            "ln2_b": nrm((1, D), 0.05),
            "w1": nrm((D, FF)),
            "b1": nrm((1, FF)),
            "w2": nrm((FF, D)),
            "b2": nrm((1, D)),
        })
    return params


# ---------------- pure-JAX f32 reference (for correctness check) ----------------

def reference_forward(prompts, tokenized_prompts, params):
    x = prompts + params["pos"]
    mask = jnp.where(jnp.tril(jnp.ones((S, S), jnp.float32)) == 1.0,
                     jnp.float32(0.0), jnp.float32(-jnp.inf))
    for lyr in params["layers"]:
        h = _layernorm(x, lyr["ln1_g"], lyr["ln1_b"])
        qkv = h @ lyr["wqkv"] + lyr["bqkv"]
        q, k, v = jnp.split(qkv, 3, axis=-1)
        q = q.reshape(B, S, H, DH)
        k = k.reshape(B, S, H, DH)
        v = v.reshape(B, S, H, DH)
        s = jnp.einsum("bqhd,bkhd->bhqk", q, k) / math.sqrt(DH) + mask
        p = jax.nn.softmax(s, axis=-1)
        a = jnp.einsum("bhqk,bkhd->bqhd", p, v).reshape(B, S, D)
        x = x + a @ lyr["wo"] + lyr["bo"]
        h = _layernorm(x, lyr["ln2_g"], lyr["ln2_b"])
        h1 = h @ lyr["w1"] + lyr["b1"]
        h1 = h1 * jax.nn.sigmoid(1.702 * h1)
        x = x + h1 @ lyr["w2"] + lyr["b2"]
    x = _layernorm(x, params["lnf_g"], params["lnf_b"])
    eot = jnp.argmax(tokenized_prompts, axis=-1)
    return x[jnp.arange(B), eot] @ params["proj"]


if __name__ == "__main__":
    key = jax.random.PRNGKey(0)
    kp, kt, kw = jax.random.split(key, 3)
    params = init_params(kw)

    prompts = jax.random.normal(kp, (B, S, D), dtype=jnp.float32)
    tokenized_prompts = jax.random.randint(kt, (B, S), 1, 1000, dtype=jnp.int32)
    eot_pos = jnp.array([5, 3], dtype=jnp.int32)
    tokenized_prompts = tokenized_prompts.at[jnp.arange(B), eot_pos].set(49407)

    out = text_encoder_forward(prompts, tokenized_prompts, params)
    out = jax.block_until_ready(out)
    assert out.shape == (B, E)

    ref = reference_forward(prompts, tokenized_prompts, params)
    # bf16 matmul operands (f32 accumulation) + approx reciprocal -> loose tolerance.
    if not jnp.allclose(out, ref, atol=2e-2, rtol=2e-2):
        raise AssertionError(
            f"mismatch vs reference, max abs err = {jnp.max(jnp.abs(out - ref))}")
    print("KERNEL_OK")
</pallas_src>

<mosaic_0001>
module attributes {stable_mosaic.version = 11 : i64} {
  func.func @text_encoder_kernel(%arg0: i32, %arg1: memref<2xi32, #tpu.memory_space<smem>>, %arg2: memref<1x8x32xf32, #tpu.memory_space<vmem>>, %arg3: memref<8x32xf32, #tpu.memory_space<vmem>>, %arg4: memref<2x1x32xf32, #tpu.memory_space<vmem>>, %arg5: memref<2x1x32xf32, #tpu.memory_space<vmem>>, %arg6: memref<2x32x96xbf16, #tpu.memory_space<vmem>>, %arg7: memref<2x1x96xf32, #tpu.memory_space<vmem>>, %arg8: memref<2x32x32xbf16, #tpu.memory_space<vmem>>, %arg9: memref<2x1x32xf32, #tpu.memory_space<vmem>>, %arg10: memref<2x1x32xf32, #tpu.memory_space<vmem>>, %arg11: memref<2x1x32xf32, #tpu.memory_space<vmem>>, %arg12: memref<2x32x128xbf16, #tpu.memory_space<vmem>>, %arg13: memref<2x1x128xf32, #tpu.memory_space<vmem>>, %arg14: memref<2x128x32xbf16, #tpu.memory_space<vmem>>, %arg15: memref<2x1x32xf32, #tpu.memory_space<vmem>>, %arg16: memref<1x32xf32, #tpu.memory_space<vmem>>, %arg17: memref<1x32xf32, #tpu.memory_space<vmem>>, %arg18: memref<32x32xbf16, #tpu.memory_space<vmem>>, %arg19: memref<1x1x32xf32, #tpu.memory_space<vmem>>) attributes {dimension_semantics = [#tpu.dimension_semantics<parallel>], iteration_bounds = array<i64: 2>, scalar_prefetch = 1 : i64, scratch_operands = 0 : i64, tpu.core_type = #tpu.core_type<tc>, window_params = [{transform_indices = @transform_0, window_bounds = array<i64: 1, 8, 32>}, {pipeline_mode = #tpu.pipeline_mode<synchronous>, transform_indices = @transform_1, window_bounds = array<i64: 8, 32>}, {pipeline_mode = #tpu.pipeline_mode<synchronous>, transform_indices = @transform_2, window_bounds = array<i64: 2, 1, 32>}, {pipeline_mode = #tpu.pipeline_mode<synchronous>, transform_indices = @transform_3, window_bounds = array<i64: 2, 1, 32>}, {pipeline_mode = #tpu.pipeline_mode<synchronous>, transform_indices = @transform_4, window_bounds = array<i64: 2, 32, 96>}, {pipeline_mode = #tpu.pipeline_mode<synchronous>, transform_indices = @transform_5, window_bounds = array<i64: 2, 1, 96>}, {pipeline_mode = #tpu.pipeline_mode<synchronous>, transform_indices = @transform_6, window_bounds = array<i64: 2, 32, 32>}, {pipeline_mode = #tpu.pipeline_mode<synchronous>, transform_indices = @transform_7, window_bounds = array<i64: 2, 1, 32>}, {pipeline_mode = #tpu.pipeline_mode<synchronous>, transform_indices = @transform_8, window_bounds = array<i64: 2, 1, 32>}, {pipeline_mode = #tpu.pipeline_mode<synchronous>, transform_indices = @transform_9, window_bounds = array<i64: 2, 1, 32>}, {pipeline_mode = #tpu.pipeline_mode<synchronous>, transform_indices = @transform_10, window_bounds = array<i64: 2, 32, 128>}, {pipeline_mode = #tpu.pipeline_mode<synchronous>, transform_indices = @transform_11, window_bounds = array<i64: 2, 1, 128>}, {pipeline_mode = #tpu.pipeline_mode<synchronous>, transform_indices = @transform_12, window_bounds = array<i64: 2, 128, 32>}, {pipeline_mode = #tpu.pipeline_mode<synchronous>, transform_indices = @transform_13, window_bounds = array<i64: 2, 1, 32>}, {pipeline_mode = #tpu.pipeline_mode<synchronous>, transform_indices = @transform_14, window_bounds = array<i64: 1, 32>}, {pipeline_mode = #tpu.pipeline_mode<synchronous>, transform_indices = @transform_15, window_bounds = array<i64: 1, 32>}, {pipeline_mode = #tpu.pipeline_mode<synchronous>, transform_indices = @transform_16, window_bounds = array<i64: 32, 32>}, {transform_indices = @transform_17, window_bounds = array<i64: 1, 1, 32>}]} {
    %c0 = arith.constant 0 : index
    %c0_0 = arith.constant 0 : index
    %c0_1 = arith.constant 0 : index
    %0 = vector.load %arg2[%c0, %c0_0, %c0_1] : memref<1x8x32xf32, #tpu.memory_space<vmem>>, vector<1x8x32xf32>
    %1 = vector.shape_cast %0 : vector<1x8x32xf32> to vector<8x32xf32>
    %c0_2 = arith.constant 0 : index
    %c0_3 = arith.constant 0 : index
    %2 = vector.load %arg3[%c0_2, %c0_3] : memref<8x32xf32, #tpu.memory_space<vmem>>, vector<8x32xf32>
    %3 = arith.addf %1, %2 : vector<8x32xf32>
    %4 = tpu.iota {dimensions = array<i32: 0>} : vector<8x8xi32>
    %5 = tpu.iota {dimensions = array<i32: 1>} : vector<8x8xi32>
    %6 = arith.cmpi sle, %5, %4 : vector<8x8xi32>
    %cst = arith.constant 0.000000e+00 : f32
    %cst_4 = arith.constant 0xFF800000 : f32
    %7 = vector.broadcast %cst : f32 to vector<8x8xf32>
    %8 = vector.broadcast %cst_4 : f32 to vector<8x8xf32>
    %9 = arith.select %6, %7, %8 : vector<8x8xi1>, vector<8x8xf32>
    %c0_5 = arith.constant 0 : index
    %c0_6 = arith.constant 0 : index
    %c0_7 = arith.constant 0 : index
    %10 = vector.load %arg4[%c0_5, %c0_6, %c0_7] : memref<2x1x32xf32, #tpu.memory_space<vmem>>, vector<1x1x32xf32>
    %11 = vector.shape_cast %10 : vector<1x1x32xf32> to vector<1x32xf32>
    %c0_8 = arith.constant 0 : index
    %c0_9 = arith.constant 0 : index
    %c0_10 = arith.constant 0 : index
    %12 = vector.load %arg5[%c0_8, %c0_9, %c0_10] : memref<2x1x32xf32, #tpu.memory_space<vmem>>, vector<1x1x32xf32>
    %13 = vector.shape_cast %12 : vector<1x1x32xf32> to vector<1x32xf32>
    %cst_11 = arith.constant dense<0.000000e+00> : vector<8xf32>
    %14 = vector.multi_reduction <add>, %3, %cst_11 [1] : vector<8x32xf32> to vector<8xf32>
    %15 = vector.shape_cast %14 : vector<8xf32> to vector<8x1xf32>
    %cst_12 = arith.constant 3.200000e+01 : f32
    %16 = vector.broadcast %cst_12 : f32 to vector<8x1xf32>
    %17 = arith.divf %15, %16 : vector<8x1xf32>
    %18 = vector.broadcast %17 : vector<8x1xf32> to vector<8x32xf32>
    %19 = arith.subf %3, %18 : vector<8x32xf32>
    %20 = arith.mulf %19, %19 : vector<8x32xf32>
    %cst_13 = arith.constant dense<0.000000e+00> : vector<8xf32>
    %21 = vector.multi_reduction <add>, %20, %cst_13 [1] : vector<8x32xf32> to vector<8xf32>
    %22 = vector.shape_cast %21 : vector<8xf32> to vector<8x1xf32>
    %cst_14 = arith.constant 3.200000e+01 : f32
    %23 = vector.broadcast %cst_14 : f32 to vector<8x1xf32>
    %24 = arith.divf %22, %23 : vector<8x1xf32>
    %25 = vector.broadcast %17 : vector<8x1xf32> to vector<8x32xf32>
    %26 = arith.subf %3, %25 : vector<8x32xf32>
    %cst_15 = arith.constant 9.99999974E-6 : f32
    %27 = vector.broadcast %cst_15 : f32 to vector<8x1xf32>
    %28 = arith.addf %24, %27 : vector<8x1xf32>
    %29 = math.rsqrt %28 : vector<8x1xf32>
    %30 = vector.broadcast %29 : vector<8x1xf32> to vector<8x32xf32>
    %31 = arith.mulf %26, %30 : vector<8x32xf32>
    %32 = vector.broadcast %11 : vector<1x32xf32> to vector<8x32xf32>
    %33 = arith.mulf %31, %32 : vector<8x32xf32>
    %34 = vector.broadcast %13 : vector<1x32xf32> to vector<8x32xf32>
    %35 = arith.addf %33, %34 : vector<8x32xf32>
    %36 = arith.truncf %35 : vector<8x32xf32> to vector<8x32xbf16>
    %c0_16 = arith.constant 0 : index
    %c0_17 = arith.constant 0 : index
    %c0_18 = arith.constant 0 : index
    %37 = vector.load %arg6[%c0_16, %c0_17, %c0_18] : memref<2x32x96xbf16, #tpu.memory_space<vmem>>, vector<1x32x96xbf16>
    %38 = vector.shape_cast %37 : vector<1x32x96xbf16> to vector<32x96xbf16>
    %cst_19 = arith.constant dense<0.000000e+00> : vector<8x96xf32>
    %39 = tpu.matmul %36, %38, %cst_19 {dimension_numbers = #tpu.dot_dimension_numbers<[1], [0], [0], [1], [0, 0, 1, 1], [], []>} : vector<8x32xbf16>, vector<32x96xbf16>, vector<8x96xf32> -> vector<8x96xf32>
    %c0_20 = arith.constant 0 : index
    %c0_21 = arith.constant 0 : index
    %c0_22 = arith.constant 0 : index
    %40 = vector.load %arg7[%c0_20, %c0_21, %c0_22] : memref<2x1x96xf32, #tpu.memory_space<vmem>>, vector<1x1x96xf32>
    %41 = vector.shape_cast %40 : vector<1x1x96xf32> to vector<1x96xf32>
    %42 = vector.broadcast %41 : vector<1x96xf32> to vector<8x96xf32>
    %43 = arith.addf %39, %42 : vector<8x96xf32>
    %44 = vector.extract_strided_slice %43 {offsets = [0, 0], sizes = [8, 8], strides = [1, 1]} : vector<8x96xf32> to vector<8x8xf32>
    %45 = vector.extract_strided_slice %43 {offsets = [0, 8], sizes = [8, 8], strides = [1, 1]} : vector<8x96xf32> to vector<8x8xf32>
    %46 = vector.extract_strided_slice %43 {offsets = [0, 16], sizes = [8, 8], strides = [1, 1]} : vector<8x96xf32> to vector<8x8xf32>
    %47 = vector.extract_strided_slice %43 {offsets = [0, 24], sizes = [8, 8], strides = [1, 1]} : vector<8x96xf32> to vector<8x8xf32>
    %48 = vector.shape_cast %44 : vector<8x8xf32> to vector<1x8x8xf32>
    %49 = vector.shape_cast %45 : vector<8x8xf32> to vector<1x8x8xf32>
    %50 = vector.shape_cast %46 : vector<8x8xf32> to vector<1x8x8xf32>
    %51 = vector.shape_cast %47 : vector<8x8xf32> to vector<1x8x8xf32>
    %52 = tpu.concatenate %48, %49, %50, %51 in 0 : vector<1x8x8xf32>, vector<1x8x8xf32>, vector<1x8x8xf32>, vector<1x8x8xf32> -> vector<4x8x8xf32>
    %53 = vector.extract_strided_slice %43 {offsets = [0, 32], sizes = [8, 8], strides = [1, 1]} : vector<8x96xf32> to vector<8x8xf32>
    %54 = vector.extract_strided_slice %43 {offsets = [0, 40], sizes = [8, 8], strides = [1, 1]} : vector<8x96xf32> to vector<8x8xf32>
    %55 = vector.extract_strided_slice %43 {offsets = [0, 48], sizes = [8, 8], strides = [1, 1]} : vector<8x96xf32> to vector<8x8xf32>
    %56 = vector.extract_strided_slice %43 {offsets = [0, 56], sizes = [8, 8], strides = [1, 1]} : vector<8x96xf32> to vector<8x8xf32>
    %57 = vector.shape_cast %53 : vector<8x8xf32> to vector<1x8x8xf32>
    %58 = vector.shape_cast %54 : vector<8x8xf32> to vector<1x8x8xf32>
    %59 = vector.shape_cast %55 : vector<8x8xf32> to vector<1x8x8xf32>
    %60 = vector.shape_cast %56 : vector<8x8xf32> to vector<1x8x8xf32>
    %61 = tpu.concatenate %57, %58, %59, %60 in 0 : vector<1x8x8xf32>, vector<1x8x8xf32>, vector<1x8x8xf32>, vector<1x8x8xf32> -> vector<4x8x8xf32>
    %62 = vector.extract_strided_slice %43 {offsets = [0, 64], sizes = [8, 8], strides = [1, 1]} : vector<8x96xf32> to vector<8x8xf32>
    %63 = vector.extract_strided_slice %43 {offsets = [0, 72], sizes = [8, 8], strides = [1, 1]} : vector<8x96xf32> to vector<8x8xf32>
    %64 = vector.extract_strided_slice %43 {offsets = [0, 80], sizes = [8, 8], strides = [1, 1]} : vector<8x96xf32> to vector<8x8xf32>
    %65 = vector.extract_strided_slice %43 {offsets = [0, 88], sizes = [8, 8], strides = [1, 1]} : vector<8x96xf32> to vector<8x8xf32>
    %66 = vector.shape_cast %62 : vector<8x8xf32> to vector<1x8x8xf32>
    %67 = vector.shape_cast %63 : vector<8x8xf32> to vector<1x8x8xf32>
    %68 = vector.shape_cast %64 : vector<8x8xf32> to vector<1x8x8xf32>
    %69 = vector.shape_cast %65 : vector<8x8xf32> to vector<1x8x8xf32>
    %70 = tpu.concatenate %66, %67, %68, %69 in 0 : vector<1x8x8xf32>, vector<1x8x8xf32>, vector<1x8x8xf32>, vector<1x8x8xf32> -> vector<4x8x8xf32>
    %71 = arith.truncf %52 : vector<4x8x8xf32> to vector<4x8x8xbf16>
    %72 = arith.truncf %61 : vector<4x8x8xf32> to vector<4x8x8xbf16>
    "tpu.trace_start"() <{level = 10 : i32, message = "hqd,hkd->hqk"}> : () -> ()
    %cst_23 = arith.constant dense<0.000000e+00> : vector<4x8x8xf32>
    %73 = tpu.matmul %71, %72, %cst_23 {dimension_numbers = #tpu.dot_dimension_numbers<[2], [2], [1], [1], [0, 0, 0, 1, 1, 1], [0], [0]>} : vector<4x8x8xbf16>, vector<4x8x8xbf16>, vector<4x8x8xf32> -> vector<4x8x8xf32>
    "tpu.trace_stop"() : () -> ()
    %74 = vector.shape_cast %9 : vector<8x8xf32> to vector<1x8x8xf32>
    %75 = vector.broadcast %74 : vector<1x8x8xf32> to vector<4x8x8xf32>
    %76 = arith.addf %73, %75 : vector<4x8x8xf32>
    %cst_24 = arith.constant dense<0xFF800000> : vector<4x8xf32>
    %77 = vector.multi_reduction <maximumf>, %76, %cst_24 [2] : vector<4x8x8xf32> to vector<4x8xf32>
    %78 = vector.shape_cast %77 : vector<4x8xf32> to vector<4x8x1xf32>
    %79 = vector.broadcast %78 : vector<4x8x1xf32> to vector<4x8x8xf32>
    %80 = arith.subf %76, %79 : vector<4x8x8xf32>
    %81 = math.exp %80 : vector<4x8x8xf32>
    %cst_25 = arith.constant dense<0.000000e+00> : vector<4x8xf32>
    %82 = vector.multi_reduction <add>, %81, %cst_25 [2] : vector<4x8x8xf32> to vector<4x8xf32>
    %83 = vector.shape_cast %82 : vector<4x8xf32> to vector<4x8x1xf32>
    %84 = arith.truncf %81 : vector<4x8x8xf32> to vector<4x8x8xbf16>
    %85 = arith.truncf %70 : vector<4x8x8xf32> to vector<4x8x8xbf16>
    "tpu.trace_start"() <{level = 10 : i32, message = "hqk,hkd->hqd"}> : () -> ()
    %cst_26 = arith.constant dense<0.000000e+00> : vector<4x8x8xf32>
    %86 = tpu.matmul %84, %85, %cst_26 {dimension_numbers = #tpu.dot_dimension_numbers<[2], [1], [1], [2], [0, 0, 0, 1, 1, 2], [0], [0]>} : vector<4x8x8xbf16>, vector<4x8x8xbf16>, vector<4x8x8xf32> -> vector<4x8x8xf32>
    "tpu.trace_stop"() : () -> ()
    %87 = tpu.reciprocal %83 {approx = true} : vector<4x8x1xf32> -> vector<4x8x1xf32>
    %88 = vector.broadcast %87 : vector<4x8x1xf32> to vector<4x8x8xf32>
    %89 = arith.mulf %86, %88 : vector<4x8x8xf32>
    %90 = vector.extract_strided_slice %89 {offsets = [0, 0, 0], sizes = [1, 8, 8], strides = [1, 1, 1]} : vector<4x8x8xf32> to vector<1x8x8xf32>
    %91 = vector.shape_cast %90 : vector<1x8x8xf32> to vector<8x8xf32>
    %92 = vector.extract_strided_slice %89 {offsets = [1, 0, 0], sizes = [1, 8, 8], strides = [1, 1, 1]} : vector<4x8x8xf32> to vector<1x8x8xf32>
    %93 = vector.shape_cast %92 : vector<1x8x8xf32> to vector<8x8xf32>
    %94 = vector.extract_strided_slice %89 {offsets = [2, 0, 0], sizes = [1, 8, 8], strides = [1, 1, 1]} : vector<4x8x8xf32> to vector<1x8x8xf32>
    %95 = vector.shape_cast %94 : vector<1x8x8xf32> to vector<8x8xf32>
    %96 = vector.extract_strided_slice %89 {offsets = [3, 0, 0], sizes = [1, 8, 8], strides = [1, 1, 1]} : vector<4x8x8xf32> to vector<1x8x8xf32>
    %97 = vector.shape_cast %96 : vector<1x8x8xf32> to vector<8x8xf32>
    %98 = tpu.concatenate %91, %93, %95, %97 in 1 : vector<8x8xf32>, vector<8x8xf32>, vector<8x8xf32>, vector<8x8xf32> -> vector<8x32xf32>
    %99 = arith.truncf %98 : vector<8x32xf32> to vector<8x32xbf16>
    %c0_27 = arith.constant 0 : index
    %c0_28 = arith.constant 0 : index
    %c0_29 = arith.constant 0 : index
    %100 = vector.load %arg8[%c0_27, %c0_28, %c0_29] : memref<2x32x32xbf16, #tpu.memory_space<vmem>>, vector<1x32x32xbf16>
    %101 = vector.shape_cast %100 : vector<1x32x32xbf16> to vector<32x32xbf16>
    %cst_30 = arith.constant dense<0.000000e+00> : vector<8x32xf32>
    %102 = tpu.matmul %99, %101, %cst_30 {dimension_numbers = #tpu.dot_dimension_numbers<[1], [0], [0], [1], [0, 0, 1, 1], [], []>} : vector<8x32xbf16>, vector<32x32xbf16>, vector<8x32xf32> -> vector<8x32xf32>
    %103 = arith.addf %3, %102 : vector<8x32xf32>
    %c0_31 = arith.constant 0 : index
    %c0_32 = arith.constant 0 : index
    %c0_33 = arith.constant 0 : index
    %104 = vector.load %arg9[%c0_31, %c0_32, %c0_33] : memref<2x1x32xf32, #tpu.memory_space<vmem>>, vector<1x1x32xf32>
    %105 = vector.shape_cast %104 : vector<1x1x32xf32> to vector<1x32xf32>
    %106 = vector.broadcast %105 : vector<1x32xf32> to vector<8x32xf32>
    %107 = arith.addf %103, %106 : vector<8x32xf32>
    %c0_34 = arith.constant 0 : index
    %c0_35 = arith.constant 0 : index
    %c0_36 = arith.constant 0 : index
    %108 = vector.load %arg10[%c0_34, %c0_35, %c0_36] : memref<2x1x32xf32, #tpu.memory_space<vmem>>, vector<1x1x32xf32>
    %109 = vector.shape_cast %108 : vector<1x1x32xf32> to vector<1x32xf32>
    %c0_37 = arith.constant 0 : index
    %c0_38 = arith.constant 0 : index
    %c0_39 = arith.constant 0 : index
    %110 = vector.load %arg11[%c0_37, %c0_38, %c0_39] : memref<2x1x32xf32, #tpu.memory_space<vmem>>, vector<1x1x32xf32>
    %111 = vector.shape_cast %110 : vector<1x1x32xf32> to vector<1x32xf32>
    %cst_40 = arith.constant dense<0.000000e+00> : vector<8xf32>
    %112 = vector.multi_reduction <add>, %107, %cst_40 [1] : vector<8x32xf32> to vector<8xf32>
    %113 = vector.shape_cast %112 : vector<8xf32> to vector<8x1xf32>
    %cst_41 = arith.constant 3.200000e+01 : f32
    %114 = vector.broadcast %cst_41 : f32 to vector<8x1xf32>
    %115 = arith.divf %113, %114 : vector<8x1xf32>
    %116 = vector.broadcast %115 : vector<8x1xf32> to vector<8x32xf32>
    %117 = arith.subf %107, %116 : vector<8x32xf32>
    %118 = arith.mulf %117, %117 : vector<8x32xf32>
    %cst_42 = arith.constant dense<0.000000e+00> : vector<8xf32>
    %119 = vector.multi_reduction <add>, %118, %cst_42 [1] : vector<8x32xf32> to vector<8xf32>
    %120 = vector.shape_cast %119 : vector<8xf32> to vector<8x1xf32>
    %cst_43 = arith.constant 3.200000e+01 : f32
    %121 = vector.broadcast %cst_43 : f32 to vector<8x1xf32>
    %122 = arith.divf %120, %121 : vector<8x1xf32>
    %123 = vector.broadcast %115 : vector<8x1xf32> to vector<8x32xf32>
    %124 = arith.subf %107, %123 : vector<8x32xf32>
    %cst_44 = arith.constant 9.99999974E-6 : f32
    %125 = vector.broadcast %cst_44 : f32 to vector<8x1xf32>
    %126 = arith.addf %122, %125 : vector<8x1xf32>
    %127 = math.rsqrt %126 : vector<8x1xf32>
    %128 = vector.broadcast %127 : vector<8x1xf32> to vector<8x32xf32>
    %129 = arith.mulf %124, %128 : vector<8x32xf32>
    %130 = vector.broadcast %109 : vector<1x32xf32> to vector<8x32xf32>
    %131 = arith.mulf %129, %130 : vector<8x32xf32>
    %132 = vector.broadcast %111 : vector<1x32xf32> to vector<8x32xf32>
    %133 = arith.addf %131, %132 : vector<8x32xf32>
    %134 = arith.truncf %133 : vector<8x32xf32> to vector<8x32xbf16>
    %c0_45 = arith.constant 0 : index
    %c0_46 = arith.constant 0 : index
    %c0_47 = arith.constant 0 : index
    %135 = vector.load %arg12[%c0_45, %c0_46, %c0_47] : memref<2x32x128xbf16, #tpu.memory_space<vmem>>, vector<1x32x128xbf16>
    %136 = vector.shape_cast %135 : vector<1x32x128xbf16> to vector<32x128xbf16>
    %cst_48 = arith.constant dense<0.000000e+00> : vector<8x128xf32>
    %137 = tpu.matmul %134, %136, %cst_48 {dimension_numbers = #tpu.dot_dimension_numbers<[1], [0], [0], [1], [0, 0, 1, 1], [], []>} : vector<8x32xbf16>, vector<32x128xbf16>, vector<8x128xf32> -> vector<8x128xf32>
    %c0_49 = arith.constant 0 : index
    %c0_50 = arith.constant 0 : index
    %c0_51 = arith.constant 0 : index
    %138 = vector.load %arg13[%c0_49, %c0_50, %c0_51] : memref<2x1x128xf32, #tpu.memory_space<vmem>>, vector<1x1x128xf32>
    %139 = vector.shape_cast %138 : vector<1x1x128xf32> to vector<1x128xf32>
    %140 = vector.broadcast %139 : vector<1x128xf32> to vector<8x128xf32>
    %141 = arith.addf %137, %140 : vector<8x128xf32>
    %cst_52 = arith.constant 1.702000e+00 : f32
    %142 = vector.broadcast %cst_52 : f32 to vector<8x128xf32>
    %143 = arith.mulf %142, %141 : vector<8x128xf32>
    %144 = arith.negf %143 : vector<8x128xf32>
    %145 = math.exp %144 : vector<8x128xf32>
    %cst_53 = arith.constant 1.000000e+00 : f32
    %146 = vector.broadcast %cst_53 : f32 to vector<8x128xf32>
    %147 = arith.addf %146, %145 : vector<8x128xf32>
    %148 = arith.divf %146, %147 : vector<8x128xf32>
    %149 = arith.mulf %141, %148 : vector<8x128xf32>
    %150 = arith.truncf %149 : vector<8x128xf32> to vector<8x128xbf16>
    %c0_54 = arith.constant 0 : index
    %c0_55 = arith.constant 0 : index
    %c0_56 = arith.constant 0 : index
    %151 = vector.load %arg14[%c0_54, %c0_55, %c0_56] : memref<2x128x32xbf16, #tpu.memory_space<vmem>>, vector<1x128x32xbf16>
    %152 = vector.shape_cast %151 : vector<1x128x32xbf16> to vector<128x32xbf16>
    %cst_57 = arith.constant dense<0.000000e+00> : vector<8x32xf32>
    %153 = tpu.matmul %150, %152, %cst_57 {dimension_numbers = #tpu.dot_dimension_numbers<[1], [0], [0], [1], [0, 0, 1, 1], [], []>} : vector<8x128xbf16>, vector<128x32xbf16>, vector<8x32xf32> -> vector<8x32xf32>
    %c0_58 = arith.constant 0 : index
    %c0_59 = arith.constant 0 : index
    %c0_60 = arith.constant 0 : index
    %154 = vector.load %arg15[%c0_58, %c0_59, %c0_60] : memref<2x1x32xf32, #tpu.memory_space<vmem>>, vector<1x1x32xf32>
    %155 = vector.shape_cast %154 : vector<1x1x32xf32> to vector<1x32xf32>
    %156 = vector.broadcast %155 : vector<1x32xf32> to vector<8x32xf32>
    %157 = arith.addf %153, %156 : vector<8x32xf32>
    %158 = arith.addf %107, %157 : vector<8x32xf32>
    %c1 = arith.constant 1 : index
    %c0_61 = arith.constant 0 : index
    %c0_62 = arith.constant 0 : index
    %159 = vector.load %arg4[%c1, %c0_61, %c0_62] : memref<2x1x32xf32, #tpu.memory_space<vmem>>, vector<1x1x32xf32>
    %160 = vector.shape_cast %159 : vector<1x1x32xf32> to vector<1x32xf32>
    %c1_63 = arith.constant 1 : index
    %c0_64 = arith.constant 0 : index
    %c0_65 = arith.constant 0 : index
    %161 = vector.load %arg5[%c1_63, %c0_64, %c0_65] : memref<2x1x32xf32, #tpu.memory_space<vmem>>, vector<1x1x32xf32>
    %162 = vector.shape_cast %161 : vector<1x1x32xf32> to vector<1x32xf32>
    %cst_66 = arith.constant dense<0.000000e+00> : vector<8xf32>
    %163 = vector.multi_reduction <add>, %158, %cst_66 [1] : vector<8x32xf32> to vector<8xf32>
    %164 = vector.shape_cast %163 : vector<8xf32> to vector<8x1xf32>
    %cst_67 = arith.constant 3.200000e+01 : f32
    %165 = vector.broadcast %cst_67 : f32 to vector<8x1xf32>
    %166 = arith.divf %164, %165 : vector<8x1xf32>
    %167 = vector.broadcast %166 : vector<8x1xf32> to vector<8x32xf32>
    %168 = arith.subf %158, %167 : vector<8x32xf32>
    %169 = arith.mulf %168, %168 : vector<8x32xf32>
    %cst_68 = arith.constant dense<0.000000e+00> : vector<8xf32>
    %170 = vector.multi_reduction <add>, %169, %cst_68 [1] : vector<8x32xf32> to vector<8xf32>
    %171 = vector.shape_cast %170 : vector<8xf32> to vector<8x1xf32>
    %cst_69 = arith.constant 3.200000e+01 : f32
    %172 = vector.broadcast %cst_69 : f32 to vector<8x1xf32>
    %173 = arith.divf %171, %172 : vector<8x1xf32>
    %174 = vector.broadcast %166 : vector<8x1xf32> to vector<8x32xf32>
    %175 = arith.subf %158, %174 : vector<8x32xf32>
    %cst_70 = arith.constant 9.99999974E-6 : f32
    %176 = vector.broadcast %cst_70 : f32 to vector<8x1xf32>
    %177 = arith.addf %173, %176 : vector<8x1xf32>
    %178 = math.rsqrt %177 : vector<8x1xf32>
    %179 = vector.broadcast %178 : vector<8x1xf32> to vector<8x32xf32>
    %180 = arith.mulf %175, %179 : vector<8x32xf32>
    %181 = vector.broadcast %160 : vector<1x32xf32> to vector<8x32xf32>
    %182 = arith.mulf %180, %181 : vector<8x32xf32>
    %183 = vector.broadcast %162 : vector<1x32xf32> to vector<8x32xf32>
    %184 = arith.addf %182, %183 : vector<8x32xf32>
    %185 = arith.truncf %184 : vector<8x32xf32> to vector<8x32xbf16>
    %c1_71 = arith.constant 1 : index
    %c0_72 = arith.constant 0 : index
    %c0_73 = arith.constant 0 : index
    %186 = vector.load %arg6[%c1_71, %c0_72, %c0_73] : memref<2x32x96xbf16, #tpu.memory_space<vmem>>, vector<1x32x96xbf16>
    %187 = vector.shape_cast %186 : vector<1x32x96xbf16> to vector<32x96xbf16>
    %cst_74 = arith.constant dense<0.000000e+00> : vector<8x96xf32>
    %188 = tpu.matmul %185, %187, %cst_74 {dimension_numbers = #tpu.dot_dimension_numbers<[1], [0], [0], [1], [0, 0, 1, 1], [], []>} : vector<8x32xbf16>, vector<32x96xbf16>, vector<8x96xf32> -> vector<8x96xf32>
    %c1_75 = arith.constant 1 : index
    %c0_76 = arith.constant 0 : index
    %c0_77 = arith.constant 0 : index
    %189 = vector.load %arg7[%c1_75, %c0_76, %c0_77] : memref<2x1x96xf32, #tpu.memory_space<vmem>>, vector<1x1x96xf32>
    %190 = vector.shape_cast %189 : vector<1x1x96xf32> to vector<1x96xf32>
    %191 = vector.broadcast %190 : vector<1x96xf32> to vector<8x96xf32>
    %192 = arith.addf %188, %191 : vector<8x96xf32>
    %193 = vector.extract_strided_slice %192 {offsets = [0, 0], sizes = [8, 8], strides = [1, 1]} : vector<8x96xf32> to vector<8x8xf32>
    %194 = vector.extract_strided_slice %192 {offsets = [0, 8], sizes = [8, 8], strides = [1, 1]} : vector<8x96xf32> to vector<8x8xf32>
    %195 = vector.extract_strided_slice %192 {offsets = [0, 16], sizes = [8, 8], strides = [1, 1]} : vector<8x96xf32> to vector<8x8xf32>
    %196 = vector.extract_strided_slice %192 {offsets = [0, 24], sizes = [8, 8], strides = [1, 1]} : vector<8x96xf32> to vector<8x8xf32>
    %197 = vector.shape_cast %193 : vector<8x8xf32> to vector<1x8x8xf32>
    %198 = vector.shape_cast %194 : vector<8x8xf32> to vector<1x8x8xf32>
    %199 = vector.shape_cast %195 : vector<8x8xf32> to vector<1x8x8xf32>
    %200 = vector.shape_cast %196 : vector<8x8xf32> to vector<1x8x8xf32>
    %201 = tpu.concatenate %197, %198, %199, %200 in 0 : vector<1x8x8xf32>, vector<1x8x8xf32>, vector<1x8x8xf32>, vector<1x8x8xf32> -> vector<4x8x8xf32>
    %202 = vector.extract_strided_slice %192 {offsets = [0, 32], sizes = [8, 8], strides = [1, 1]} : vector<8x96xf32> to vector<8x8xf32>
    %203 = vector.extract_strided_slice %192 {offsets = [0, 40], sizes = [8, 8], strides = [1, 1]} : vector<8x96xf32> to vector<8x8xf32>
    %204 = vector.extract_strided_slice %192 {offsets = [0, 48], sizes = [8, 8], strides = [1, 1]} : vector<8x96xf32> to vector<8x8xf32>
    %205 = vector.extract_strided_slice %192 {offsets = [0, 56], sizes = [8, 8], strides = [1, 1]} : vector<8x96xf32> to vector<8x8xf32>
    %206 = vector.shape_cast %202 : vector<8x8xf32> to vector<1x8x8xf32>
    %207 = vector.shape_cast %203 : vector<8x8xf32> to vector<1x8x8xf32>
    %208 = vector.shape_cast %204 : vector<8x8xf32> to vector<1x8x8xf32>
    %209 = vector.shape_cast %205 : vector<8x8xf32> to vector<1x8x8xf32>
    %210 = tpu.concatenate %206, %207, %208, %209 in 0 : vector<1x8x8xf32>, vector<1x8x8xf32>, vector<1x8x8xf32>, vector<1x8x8xf32> -> vector<4x8x8xf32>
    %211 = vector.extract_strided_slice %192 {offsets = [0, 64], sizes = [8, 8], strides = [1, 1]} : vector<8x96xf32> to vector<8x8xf32>
    %212 = vector.extract_strided_slice %192 {offsets = [0, 72], sizes = [8, 8], strides = [1, 1]} : vector<8x96xf32> to vector<8x8xf32>
    %213 = vector.extract_strided_slice %192 {offsets = [0, 80], sizes = [8, 8], strides = [1, 1]} : vector<8x96xf32> to vector<8x8xf32>
    %214 = vector.extract_strided_slice %192 {offsets = [0, 88], sizes = [8, 8], strides = [1, 1]} : vector<8x96xf32> to vector<8x8xf32>
    %215 = vector.shape_cast %211 : vector<8x8xf32> to vector<1x8x8xf32>
    %216 = vector.shape_cast %212 : vector<8x8xf32> to vector<1x8x8xf32>
    %217 = vector.shape_cast %213 : vector<8x8xf32> to vector<1x8x8xf32>
    %218 = vector.shape_cast %214 : vector<8x8xf32> to vector<1x8x8xf32>
    %219 = tpu.concatenate %215, %216, %217, %218 in 0 : vector<1x8x8xf32>, vector<1x8x8xf32>, vector<1x8x8xf32>, vector<1x8x8xf32> -> vector<4x8x8xf32>
    %220 = arith.truncf %201 : vector<4x8x8xf32> to vector<4x8x8xbf16>
    %221 = arith.truncf %210 : vector<4x8x8xf32> to vector<4x8x8xbf16>
    "tpu.trace_start"() <{level = 10 : i32, message = "hqd,hkd->hqk"}> : () -> ()
    %cst_78 = arith.constant dense<0.000000e+00> : vector<4x8x8xf32>
    %222 = tpu.matmul %220, %221, %cst_78 {dimension_numbers = #tpu.dot_dimension_numbers<[2], [2], [1], [1], [0, 0, 0, 1, 1, 1], [0], [0]>} : vector<4x8x8xbf16>, vector<4x8x8xbf16>, vector<4x8x8xf32> -> vector<4x8x8xf32>
    "tpu.trace_stop"() : () -> ()
    %223 = vector.shape_cast %9 : vector<8x8xf32> to vector<1x8x8xf32>
    %224 = vector.broadcast %223 : vector<1x8x8xf32> to vector<4x8x8xf32>
    %225 = arith.addf %222, %224 : vector<4x8x8xf32>
    %cst_79 = arith.constant dense<0xFF800000> : vector<4x8xf32>
    %226 = vector.multi_reduction <maximumf>, %225, %cst_79 [2] : vector<4x8x8xf32> to vector<4x8xf32>
    %227 = vector.shape_cast %226 : vector<4x8xf32> to vector<4x8x1xf32>
    %228 = vector.broadcast %227 : vector<4x8x1xf32> to vector<4x8x8xf32>
    %229 = arith.subf %225, %228 : vector<4x8x8xf32>
    %230 = math.exp %229 : vector<4x8x8xf32>
    %cst_80 = arith.constant dense<0.000000e+00> : vector<4x8xf32>
    %231 = vector.multi_reduction <add>, %230, %cst_80 [2] : vector<4x8x8xf32> to vector<4x8xf32>
    %232 = vector.shape_cast %231 : vector<4x8xf32> to vector<4x8x1xf32>
    %233 = arith.truncf %230 : vector<4x8x8xf32> to vector<4x8x8xbf16>
    %234 = arith.truncf %219 : vector<4x8x8xf32> to vector<4x8x8xbf16>
    "tpu.trace_start"() <{level = 10 : i32, message = "hqk,hkd->hqd"}> : () -> ()
    %cst_81 = arith.constant dense<0.000000e+00> : vector<4x8x8xf32>
    %235 = tpu.matmul %233, %234, %cst_81 {dimension_numbers = #tpu.dot_dimension_numbers<[2], [1], [1], [2], [0, 0, 0, 1, 1, 2], [0], [0]>} : vector<4x8x8xbf16>, vector<4x8x8xbf16>, vector<4x8x8xf32> -> vector<4x8x8xf32>
    "tpu.trace_stop"() : () -> ()
    %236 = tpu.reciprocal %232 {approx = true} : vector<4x8x1xf32> -> vector<4x8x1xf32>
    %237 = vector.broadcast %236 : vector<4x8x1xf32> to vector<4x8x8xf32>
    %238 = arith.mulf %235, %237 : vector<4x8x8xf32>
    %239 = vector.extract_strided_slice %238 {offsets = [0, 0, 0], sizes = [1, 8, 8], strides = [1, 1, 1]} : vector<4x8x8xf32> to vector<1x8x8xf32>
    %240 = vector.shape_cast %239 : vector<1x8x8xf32> to vector<8x8xf32>
    %241 = vector.extract_strided_slice %238 {offsets = [1, 0, 0], sizes = [1, 8, 8], strides = [1, 1, 1]} : vector<4x8x8xf32> to vector<1x8x8xf32>
    %242 = vector.shape_cast %241 : vector<1x8x8xf32> to vector<8x8xf32>
    %243 = vector.extract_strided_slice %238 {offsets = [2, 0, 0], sizes = [1, 8, 8], strides = [1, 1, 1]} : vector<4x8x8xf32> to vector<1x8x8xf32>
    %244 = vector.shape_cast %243 : vector<1x8x8xf32> to vector<8x8xf32>
    %245 = vector.extract_strided_slice %238 {offsets = [3, 0, 0], sizes = [1, 8, 8], strides = [1, 1, 1]} : vector<4x8x8xf32> to vector<1x8x8xf32>
    %246 = vector.shape_cast %245 : vector<1x8x8xf32> to vector<8x8xf32>
    %247 = tpu.concatenate %240, %242, %244, %246 in 1 : vector<8x8xf32>, vector<8x8xf32>, vector<8x8xf32>, vector<8x8xf32> -> vector<8x32xf32>
    %248 = arith.truncf %247 : vector<8x32xf32> to vector<8x32xbf16>
    %c1_82 = arith.constant 1 : index
    %c0_83 = arith.constant 0 : index
    %c0_84 = arith.constant 0 : index
    %249 = vector.load %arg8[%c1_82, %c0_83, %c0_84] : memref<2x32x32xbf16, #tpu.memory_space<vmem>>, vector<1x32x32xbf16>
    %250 = vector.shape_cast %249 : vector<1x32x32xbf16> to vector<32x32xbf16>
    %cst_85 = arith.constant dense<0.000000e+00> : vector<8x32xf32>
    %251 = tpu.matmul %248, %250, %cst_85 {dimension_numbers = #tpu.dot_dimension_numbers<[1], [0], [0], [1], [0, 0, 1, 1], [], []>} : vector<8x32xbf16>, vector<32x32xbf16>, vector<8x32xf32> -> vector<8x32xf32>
    %252 = arith.addf %158, %251 : vector<8x32xf32>
    %c1_86 = arith.constant 1 : index
    %c0_87 = arith.constant 0 : index
    %c0_88 = arith.constant 0 : index
    %253 = vector.load %arg9[%c1_86, %c0_87, %c0_88] : memref<2x1x32xf32, #tpu.memory_space<vmem>>, vector<1x1x32xf32>
    %254 = vector.shape_cast %253 : vector<1x1x32xf32> to vector<1x32xf32>
    %255 = vector.broadcast %254 : vector<1x32xf32> to vector<8x32xf32>
    %256 = arith.addf %252, %255 : vector<8x32xf32>
    %c1_89 = arith.constant 1 : index
    %c0_90 = arith.constant 0 : index
    %c0_91 = arith.constant 0 : index
    %257 = vector.load %arg10[%c1_89, %c0_90, %c0_91] : memref<2x1x32xf32, #tpu.memory_space<vmem>>, vector<1x1x32xf32>
    %258 = vector.shape_cast %257 : vector<1x1x32xf32> to vector<1x32xf32>
    %c1_92 = arith.constant 1 : index
    %c0_93 = arith.constant 0 : index
    %c0_94 = arith.constant 0 : index
    %259 = vector.load %arg11[%c1_92, %c0_93, %c0_94] : memref<2x1x32xf32, #tpu.memory_space<vmem>>, vector<1x1x32xf32>
    %260 = vector.shape_cast %259 : vector<1x1x32xf32> to vector<1x32xf32>
    %cst_95 = arith.constant dense<0.000000e+00> : vector<8xf32>
    %261 = vector.multi_reduction <add>, %256, %cst_95 [1] : vector<8x32xf32> to vector<8xf32>
    %262 = vector.shape_cast %261 : vector<8xf32> to vector<8x1xf32>
    %cst_96 = arith.constant 3.200000e+01 : f32
    %263 = vector.broadcast %cst_96 : f32 to vector<8x1xf32>
    %264 = arith.divf %262, %263 : vector<8x1xf32>
    %265 = vector.broadcast %264 : vector<8x1xf32> to vector<8x32xf32>
    %266 = arith.subf %256, %265 : vector<8x32xf32>
    %267 = arith.mulf %266, %266 : vector<8x32xf32>
    %cst_97 = arith.constant dense<0.000000e+00> : vector<8xf32>
    %268 = vector.multi_reduction <add>, %267, %cst_97 [1] : vector<8x32xf32> to vector<8xf32>
    %269 = vector.shape_cast %268 : vector<8xf32> to vector<8x1xf32>
    %cst_98 = arith.constant 3.200000e+01 : f32
    %270 = vector.broadcast %cst_98 : f32 to vector<8x1xf32>
    %271 = arith.divf %269, %270 : vector<8x1xf32>
    %272 = vector.broadcast %264 : vector<8x1xf32> to vector<8x32xf32>
    %273 = arith.subf %256, %272 : vector<8x32xf32>
    %cst_99 = arith.constant 9.99999974E-6 : f32
    %274 = vector.broadcast %cst_99 : f32 to vector<8x1xf32>
    %275 = arith.addf %271, %274 : vector<8x1xf32>
    %276 = math.rsqrt %275 : vector<8x1xf32>
    %277 = vector.broadcast %276 : vector<8x1xf32> to vector<8x32xf32>
    %278 = arith.mulf %273, %277 : vector<8x32xf32>
    %279 = vector.broadcast %258 : vector<1x32xf32> to vector<8x32xf32>
    %280 = arith.mulf %278, %279 : vector<8x32xf32>
    %281 = vector.broadcast %260 : vector<1x32xf32> to vector<8x32xf32>
    %282 = arith.addf %280, %281 : vector<8x32xf32>
    %283 = arith.truncf %282 : vector<8x32xf32> to vector<8x32xbf16>
    %c1_100 = arith.constant 1 : index
    %c0_101 = arith.constant 0 : index
    %c0_102 = arith.constant 0 : index
    %284 = vector.load %arg12[%c1_100, %c0_101, %c0_102] : memref<2x32x128xbf16, #tpu.memory_space<vmem>>, vector<1x32x128xbf16>
    %285 = vector.shape_cast %284 : vector<1x32x128xbf16> to vector<32x128xbf16>
    %cst_103 = arith.constant dense<0.000000e+00> : vector<8x128xf32>
    %286 = tpu.matmul %283, %285, %cst_103 {dimension_numbers = #tpu.dot_dimension_numbers<[1], [0], [0], [1], [0, 0, 1, 1], [], []>} : vector<8x32xbf16>, vector<32x128xbf16>, vector<8x128xf32> -> vector<8x128xf32>
    %c1_104 = arith.constant 1 : index
    %c0_105 = arith.constant 0 : index
    %c0_106 = arith.constant 0 : index
    %287 = vector.load %arg13[%c1_104, %c0_105, %c0_106] : memref<2x1x128xf32, #tpu.memory_space<vmem>>, vector<1x1x128xf32>
    %288 = vector.shape_cast %287 : vector<1x1x128xf32> to vector<1x128xf32>
    %289 = vector.broadcast %288 : vector<1x128xf32> to vector<8x128xf32>
    %290 = arith.addf %286, %289 : vector<8x128xf32>
    %cst_107 = arith.constant 1.702000e+00 : f32
    %291 = vector.broadcast %cst_107 : f32 to vector<8x128xf32>
    %292 = arith.mulf %291, %290 : vector<8x128xf32>
    %293 = arith.negf %292 : vector<8x128xf32>
    %294 = math.exp %293 : vector<8x128xf32>
    %cst_108 = arith.constant 1.000000e+00 : f32
    %295 = vector.broadcast %cst_108 : f32 to vector<8x128xf32>
    %296 = arith.addf %295, %294 : vector<8x128xf32>
    %297 = arith.divf %295, %296 : vector<8x128xf32>
    %298 = arith.mulf %290, %297 : vector<8x128xf32>
    %299 = arith.truncf %298 : vector<8x128xf32> to vector<8x128xbf16>
    %c1_109 = arith.constant 1 : index
    %c0_110 = arith.constant 0 : index
    %c0_111 = arith.constant 0 : index
    %300 = vector.load %arg14[%c1_109, %c0_110, %c0_111] : memref<2x128x32xbf16, #tpu.memory_space<vmem>>, vector<1x128x32xbf16>
    %301 = vector.shape_cast %300 : vector<1x128x32xbf16> to vector<128x32xbf16>
    %cst_112 = arith.constant dense<0.000000e+00> : vector<8x32xf32>
    %302 = tpu.matmul %299, %301, %cst_112 {dimension_numbers = #tpu.dot_dimension_numbers<[1], [0], [0], [1], [0, 0, 1, 1], [], []>} : vector<8x128xbf16>, vector<128x32xbf16>, vector<8x32xf32> -> vector<8x32xf32>
    %c1_113 = arith.constant 1 : index
    %c0_114 = arith.constant 0 : index
    %c0_115 = arith.constant 0 : index
    %303 = vector.load %arg15[%c1_113, %c0_114, %c0_115] : memref<2x1x32xf32, #tpu.memory_space<vmem>>, vector<1x1x32xf32>
    %304 = vector.shape_cast %303 : vector<1x1x32xf32> to vector<1x32xf32>
    %305 = vector.broadcast %304 : vector<1x32xf32> to vector<8x32xf32>
    %306 = arith.addf %302, %305 : vector<8x32xf32>
    %307 = arith.addf %256, %306 : vector<8x32xf32>
    %308 = arith.index_cast %arg0 : i32 to index
    %309 = memref.load %arg1[%308] : memref<2xi32, #tpu.memory_space<smem>>
    %310 = tpu.iota {dimensions = array<i32: 0>} : vector<8x1xi32>
    %311 = vector.broadcast %309 : i32 to vector<8x1xi32>
    %312 = arith.cmpi eq, %310, %311 : vector<8x1xi32>
    %cst_116 = arith.constant 0.000000e+00 : f32
    %313 = vector.shape_cast %312 : vector<8x1xi1> to vector<8x1xi1>
    %314 = vector.broadcast %313 : vector<8x1xi1> to vector<8x32xi1>
    %315 = vector.broadcast %cst_116 : f32 to vector<8x32xf32>
    %316 = arith.select %314, %307, %315 : vector<8x32xi1>, vector<8x32xf32>
    %cst_117 = arith.constant dense<0.000000e+00> : vector<32xf32>
    %317 = vector.multi_reduction <add>, %316, %cst_117 [0] : vector<8x32xf32> to vector<32xf32>
    %318 = vector.shape_cast %317 : vector<32xf32> to vector<1x32xf32>
    %c0_118 = arith.constant 0 : index
    %c0_119 = arith.constant 0 : index
    %319 = vector.load %arg16[%c0_118, %c0_119] : memref<1x32xf32, #tpu.memory_space<vmem>>, vector<1x32xf32>
    %c0_120 = arith.constant 0 : index
    %c0_121 = arith.constant 0 : index
    %320 = vector.load %arg17[%c0_120, %c0_121] : memref<1x32xf32, #tpu.memory_space<vmem>>, vector<1x32xf32>
    %cst_122 = arith.constant dense<0.000000e+00> : vector<1xf32>
    %321 = vector.multi_reduction <add>, %318, %cst_122 [1] : vector<1x32xf32> to vector<1xf32>
    %322 = vector.shape_cast %321 : vector<1xf32> to vector<1x1xf32>
    %cst_123 = arith.constant 3.200000e+01 : f32
    %323 = vector.broadcast %cst_123 : f32 to vector<1x1xf32>
    %324 = arith.divf %322, %323 : vector<1x1xf32>
    %325 = vector.broadcast %324 : vector<1x1xf32> to vector<1x32xf32>
    %326 = arith.subf %318, %325 : vector<1x32xf32>
    %327 = arith.mulf %326, %326 : vector<1x32xf32>
    %cst_124 = arith.constant dense<0.000000e+00> : vector<1xf32>
    %328 = vector.multi_reduction <add>, %327, %cst_124 [1] : vector<1x32xf32> to vector<1xf32>
    %329 = vector.shape_cast %328 : vector<1xf32> to vector<1x1xf32>
    %cst_125 = arith.constant 3.200000e+01 : f32
    %330 = vector.broadcast %cst_125 : f32 to vector<1x1xf32>
    %331 = arith.divf %329, %330 : vector<1x1xf32>
    %332 = vector.broadcast %324 : vector<1x1xf32> to vector<1x32xf32>
    %333 = arith.subf %318, %332 : vector<1x32xf32>
    %cst_126 = arith.constant 9.99999974E-6 : f32
    %334 = vector.broadcast %cst_126 : f32 to vector<1x1xf32>
    %335 = arith.addf %331, %334 : vector<1x1xf32>
    %336 = math.rsqrt %335 : vector<1x1xf32>
    %337 = vector.broadcast %336 : vector<1x1xf32> to vector<1x32xf32>
    %338 = arith.mulf %333, %337 : vector<1x32xf32>
    %339 = arith.mulf %338, %319 : vector<1x32xf32>
    %340 = arith.addf %339, %320 : vector<1x32xf32>
    %341 = arith.truncf %340 : vector<1x32xf32> to vector<1x32xbf16>
    %c0_127 = arith.constant 0 : index
    %c0_128 = arith.constant 0 : index
    %342 = vector.load %arg18[%c0_127, %c0_128] : memref<32x32xbf16, #tpu.memory_space<vmem>>, vector<32x32xbf16>
    %cst_129 = arith.constant dense<0.000000e+00> : vector<1x32xf32>
    %343 = tpu.matmul %341, %342, %cst_129 {dimension_numbers = #tpu.dot_dimension_numbers<[1], [0], [0], [1], [0, 0, 1, 1], [], []>} : vector<1x32xbf16>, vector<32x32xbf16>, vector<1x32xf32> -> vector<1x32xf32>
    %c0_130 = arith.constant 0 : index
    %c0_131 = arith.constant 0 : index
    %c0_132 = arith.constant 0 : index
    %344 = vector.load %arg19[%c0_130, %c0_131, %c0_132] : memref<1x1x32xf32, #tpu.memory_space<vmem>>, vector<1x1x32xf32>
    %345 = vector.shape_cast %344 : vector<1x1x32xf32> to vector<1x32xf32>
    %346 = vector.shape_cast %343 : vector<1x32xf32> to vector<1x1x32xf32>
    tpu.vector_store %arg19[%c0_130, %c0_131, %c0_132], %346 {strides = array<i32>} : memref<1x1x32xf32, #tpu.memory_space<vmem>>, vector<1x1x32xf32>,
    return
  }
  func.func @transform_0(%arg0: i32, %arg1: memref<2xi32, #tpu.memory_space<smem>>) -> (i32, i32, i32) {
    %c0_i32 = arith.constant 0 : i32
    %c0_i32_0 = arith.constant 0 : i32
    %c0_i32_1 = arith.constant 0 : i32
    return %arg0, %c0_i32, %c0_i32_0 : i32, i32, i32
  }
  func.func @transform_1(%arg0: i32, %arg1: memref<2xi32, #tpu.memory_space<smem>>) -> (i32, i32) {
    %c0_i32 = arith.constant 0 : i32
    %c0_i32_0 = arith.constant 0 : i32
    %c0_i32_1 = arith.constant 0 : i32
    return %c0_i32, %c0_i32_0 : i32, i32
  }
  func.func @transform_2(%arg0: i32, %arg1: memref<2xi32, #tpu.memory_space<smem>>) -> (i32, i32, i32) {
    %c0_i32 = arith.constant 0 : i32
    %c0_i32_0 = arith.constant 0 : i32
    %c0_i32_1 = arith.constant 0 : i32
    %c0_i32_2 = arith.constant 0 : i32
    return %c0_i32, %c0_i32_0, %c0_i32_1 : i32, i32, i32
  }
  func.func @transform_3(%arg0: i32, %arg1: memref<2xi32, #tpu.memory_space<smem>>) -> (i32, i32, i32) {
    %c0_i32 = arith.constant 0 : i32
    %c0_i32_0 = arith.constant 0 : i32
    %c0_i32_1 = arith.constant 0 : i32
    %c0_i32_2 = arith.constant 0 : i32
    return %c0_i32, %c0_i32_0, %c0_i32_1 : i32, i32, i32
  }
  func.func @transform_4(%arg0: i32, %arg1: memref<2xi32, #tpu.memory_space<smem>>) -> (i32, i32, i32) {
    %c0_i32 = arith.constant 0 : i32
    %c0_i32_0 = arith.constant 0 : i32
    %c0_i32_1 = arith.constant 0 : i32
    %c0_i32_2 = arith.constant 0 : i32
    return %c0_i32, %c0_i32_0, %c0_i32_1 : i32, i32, i32
  }
  func.func @transform_5(%arg0: i32, %arg1: memref<2xi32, #tpu.memory_space<smem>>) -> (i32, i32, i32) {
    %c0_i32 = arith.constant 0 : i32
    %c0_i32_0 = arith.constant 0 : i32
    %c0_i32_1 = arith.constant 0 : i32
    %c0_i32_2 = arith.constant 0 : i32
    return %c0_i32, %c0_i32_0, %c0_i32_1 : i32, i32, i32
  }
  func.func @transform_6(%arg0: i32, %arg1: memref<2xi32, #tpu.memory_space<smem>>) -> (i32, i32, i32) {
    %c0_i32 = arith.constant 0 : i32
    %c0_i32_0 = arith.constant 0 : i32
    %c0_i32_1 = arith.constant 0 : i32
    %c0_i32_2 = arith.constant 0 : i32
    return %c0_i32, %c0_i32_0, %c0_i32_1 : i32, i32, i32
  }
  func.func @transform_7(%arg0: i32, %arg1: memref<2xi32, #tpu.memory_space<smem>>) -> (i32, i32, i32) {
    %c0_i32 = arith.constant 0 : i32
    %c0_i32_0 = arith.constant 0 : i32
    %c0_i32_1 = arith.constant 0 : i32
    %c0_i32_2 = arith.constant 0 : i32
    return %c0_i32, %c0_i32_0, %c0_i32_1 : i32, i32, i32
  }
  func.func @transform_8(%arg0: i32, %arg1: memref<2xi32, #tpu.memory_space<smem>>) -> (i32, i32, i32) {
    %c0_i32 = arith.constant 0 : i32
    %c0_i32_0 = arith.constant 0 : i32
    %c0_i32_1 = arith.constant 0 : i32
    %c0_i32_2 = arith.constant 0 : i32
    return %c0_i32, %c0_i32_0, %c0_i32_1 : i32, i32, i32
  }
  func.func @transform_9(%arg0: i32, %arg1: memref<2xi32, #tpu.memory_space<smem>>) -> (i32, i32, i32) {
    %c0_i32 = arith.constant 0 : i32
    %c0_i32_0 = arith.constant 0 : i32
    %c0_i32_1 = arith.constant 0 : i32
    %c0_i32_2 = arith.constant 0 : i32
    return %c0_i32, %c0_i32_0, %c0_i32_1 : i32, i32, i32
  }
  func.func @transform_10(%arg0: i32, %arg1: memref<2xi32, #tpu.memory_space<smem>>) -> (i32, i32, i32) {
    %c0_i32 = arith.constant 0 : i32
    %c0_i32_0 = arith.constant 0 : i32
    %c0_i32_1 = arith.constant 0 : i32
    %c0_i32_2 = arith.constant 0 : i32
    return %c0_i32, %c0_i32_0, %c0_i32_1 : i32, i32, i32
  }
  func.func @transform_11(%arg0: i32, %arg1: memref<2xi32, #tpu.memory_space<smem>>) -> (i32, i32, i32) {
    %c0_i32 = arith.constant 0 : i32
    %c0_i32_0 = arith.constant 0 : i32
    %c0_i32_1 = arith.constant 0 : i32
    %c0_i32_2 = arith.constant 0 : i32
    return %c0_i32, %c0_i32_0, %c0_i32_1 : i32, i32, i32
  }
  func.func @transform_12(%arg0: i32, %arg1: memref<2xi32, #tpu.memory_space<smem>>) -> (i32, i32, i32) {
    %c0_i32 = arith.constant 0 : i32
    %c0_i32_0 = arith.constant 0 : i32
    %c0_i32_1 = arith.constant 0 : i32
    %c0_i32_2 = arith.constant 0 : i32
    return %c0_i32, %c0_i32_0, %c0_i32_1 : i32, i32, i32
  }
  func.func @transform_13(%arg0: i32, %arg1: memref<2xi32, #tpu.memory_space<smem>>) -> (i32, i32, i32) {
    %c0_i32 = arith.constant 0 : i32
    %c0_i32_0 = arith.constant 0 : i32
    %c0_i32_1 = arith.constant 0 : i32
    %c0_i32_2 = arith.constant 0 : i32
    return %c0_i32, %c0_i32_0, %c0_i32_1 : i32, i32, i32
  }
  func.func @transform_14(%arg0: i32, %arg1: memref<2xi32, #tpu.memory_space<smem>>) -> (i32, i32) {
    %c0_i32 = arith.constant 0 : i32
    %c0_i32_0 = arith.constant 0 : i32
    %c0_i32_1 = arith.constant 0 : i32
    return %c0_i32, %c0_i32_0 : i32, i32
  }
  func.func @transform_15(%arg0: i32, %arg1: memref<2xi32, #tpu.memory_space<smem>>) -> (i32, i32) {
    %c0_i32 = arith.constant 0 : i32
    %c0_i32_0 = arith.constant 0 : i32
    %c0_i32_1 = arith.constant 0 : i32
    return %c0_i32, %c0_i32_0 : i32, i32
  }
  func.func @transform_16(%arg0: i32, %arg1: memref<2xi32, #tpu.memory_space<smem>>) -> (i32, i32) {
    %c0_i32 = arith.constant 0 : i32
    %c0_i32_0 = arith.constant 0 : i32
    %c0_i32_1 = arith.constant 0 : i32
    return %c0_i32, %c0_i32_0 : i32, i32
  }
  func.func @transform_17(%arg0: i32, %arg1: memref<2xi32, #tpu.memory_space<smem>>) -> (i32, i32, i32) {
    %c0_i32 = arith.constant 0 : i32
    %c0_i32_0 = arith.constant 0 : i32
    %c0_i32_1 = arith.constant 0 : i32
    return %arg0, %c0_i32, %c0_i32_0 : i32, i32, i32
  }
}

</mosaic_0001>

<bundles_post_ra>
// kernel: tpu_custom_call.1
= control target key start
LH: loop header
LB: loop body
LE: loop exit
PB: predicated region body
PF: predicated region fallthrough
CT: control target
= control target key end

     0   :  { %s3633_s0 = inlined_call_operand.vmem [shape: s32[2], index: 0, kind: input, shape index: {}]   ;;  %s3634_s1 = inlined_call_operand.vmem [shape: f32[2,8,32], index: 1, kind: input, shape index: {}]   ;;  %s3635_s2 = inlined_call_operand.vmem [shape: f32[8,32], index: 2, kind: input, shape index: {}]   ;;  %s3636_s3 = inlined_call_operand.vmem [shape: f32[2,1,32], index: 3, kind: input, shape index: {}]   ;;  %s3637_s4 = inlined_call_operand.vmem [shape: f32[2,1,32], index: 4, kind: input, shape index: {}]   ;;  %s3638_s5 = inlined_call_operand.vmem [shape: bf16[2,32,96], index: 5, kind: input, shape index: {}]   ;;  %s3639_s6 = inlined_call_operand.vmem [shape: f32[2,1,96], index: 6, kind: input, shape index: {}]   ;;  %s3640_s7 = inlined_call_operand.vmem [shape: bf16[2,32,32], index: 7, kind: input, shape index: {}]   ;;  %s3641_s8 = inlined_call_operand.vmem [shape: f32[2,1,32], index: 8, kind: input, shape index: {}]   ;;  %s3642_s9 = inlined_call_operand.vmem [shape: f32[2,1,32], index: 9, kind: input, shape index: {}]   ;;  %s3643_s10 = inlined_call_operand.vmem [shape: f32[2,1,32], index: 10, kind: input, shape index: {}]   ;;  %s3644_s11 = inlined_call_operand.vmem [shape: bf16[2,32,128], index: 11, kind: input, shape index: {}]   ;;  %s3645_s12 = inlined_call_operand.vmem [shape: f32[2,1,128], index: 12, kind: input, shape index: {}]   ;;  %s3646_s13 = inlined_call_operand.vmem [shape: bf16[2,128,32], index: 13, kind: input, shape index: {}]   ;;  %s3647_s14 = inlined_call_operand.vmem [shape: f32[2,1,32], index: 14, kind: input, shape index: {}]   ;;  %s3648_s15 = inlined_call_operand.vmem [shape: f32[1,32], index: 15, kind: input, shape index: {}]   ;;  %s3649_s16 = inlined_call_operand.vmem [shape: f32[1,32], index: 16, kind: input, shape index: {}]   ;;  %s3650_s17 = inlined_call_operand.vmem [shape: bf16[32,32], index: 17, kind: input, shape index: {}]   ;;  %s3651_s18 = inlined_call_operand.hbm [shape: f32[2,1,32], index: 18, kind: output, shape index: {}]  }
   0x1   :  { %3662 = sst [smem:[#allocation10_spill]] %s3633_s0 }
   0x2   :  { %3663 = sst [smem:[#allocation11_spill]] %s3634_s1  ;;  %s3668_s29 = sld [smem:[#allocation10_spill]] }
   0x3   :  { %3664 = sst [smem:[#allocation12_spill]] %s3635_s2 }
   0x4   :  { %3665 = sst [smem:[#allocation13_spill]] %s3636_s3 }
   0x5   :  { %3666 = sst [smem:[#allocation14_spill]] %s3637_s4 }
   0x6   :  { %3667 = sst [smem:[#allocation15_spill]] %s3645_s12 }
   0x8   :  { %s23_s12 = sshll.u32 %s3668_s29, 4  ;;  %s24_s12 = int_to_ptr.vmem [resolvable:$true] %s23_s12 }
   0x9   :  { %s2941_s30 = scalar_lea.vmem %s24_s12, 16  ;;  %p2946_p1 = scmp.lt.s32.totalorder %s24_s12, %s24_s12 }
   0xa   :  { %p2942_p0 = scmp.ne.s32.totalorder %s24_s12, %s2941_s30  ;;  %p2947_p2 = scmp.lt.s32.totalorder %s2941_s30, %s2941_s30 }
   0xc   :  { %p2948_p3 = por %p2947_p2, %p2946_p1 }
   0xe   :  { %p2949_p4 = pnand %p2948_p3, %p2942_p0 }
  0x10   :  { %2952 = shalt.err (!%p2949_p4)  }
  0x11   :  { %s3019_s0 = smov [#allocation3]  }
  0x12   :  { %26 = dma.vmem_to_smem %s24_s12, 16, %s3019_s0, [#allocation2] }
  0x13   :  { %2997 = dma.done.wait [#allocation2], 16 }
  0x14   :  { %2998 = vsyncadd [#allocation2], 4294967280 }
  0x15   :  { %28 = sfence }
  0x16   :  { %29 = vsyncpa [#allocation5], 0 }
  0x17   :  { %31 = vsyncpa [#allocation5 + $0x1], 0  ;;  %s3130_s19 = smov 0   ;;  %s3132_s1 = smov 0  }
  0x18   :  { %s3134_s20 = smov 0   ;;  %s3136_s21 = smov 0  }
  0x19 LB: > { %3669 = sst [smem:[#allocation8_spill]] %s3013_s20  ;;  %s3151_s12 = sadd.s32 4294967295, %s3017_s21   ;;  %s3017_s21 = sphi %s3136_s21, %s3688_s21   ;;  %s3013_s20 = sphi %s3134_s20, %s3685_s20   ;;  %s3009_s1 = sphi %s3132_s1, %s3687_s1   ;;  %s3005_s19 = sphi %s3130_s19, %s3686_s19  }
  0x1a   : > { %s2432_s22 = sadd.s32 4294967294, %s3017_s21   ;;  %s3155_s2 = sadd.s32 1, %s3017_s21  }
  0x1b   : > { %s406_s23 = sadd.s32 1, %s3013_s20  ;;  %s403_s24 = ssub.s32 %s3017_s21, %s3155_s2 }
  0x1c   : > { %p416_p5 = scmp.ne.s32.totalorder %s3013_s20, %s3009_s1  ;;  %p404_p6 = scmp.eq.s32.totalorder %s403_s24, 0 }
  0x1d   : > { %p417_p7 = scmp.eq.s32.totalorder %s3151_s12, 1  ;;  %p422_p8 = scmp.ne.s32.totalorder %s3009_s1, %s3005_s19 }
  0x1e   : > { %p423_p9 = scmp.eq.s32.totalorder %s2432_s22, 1  ;;  %p2435_p12 = scmp.ge.s32.totalorder %s3017_s21, 1 }
  0x1f   : > { %s3166_s25 = scalar_select %p404_p6, %s3013_s20, %s406_s23  }
  0x20   : > { %p3168_p10 = por %p417_p7, %p416_p5  ;;  %p3172_p11 = por %p423_p9, %p422_p8 }
  0x21   : > { %3670 = sst [smem:[#allocation9_spill]] %s3166_s25  ;;  %p496_p13 = scmp.lt.s32.totalorder %s3017_s21, 3 }
  0x23   : > { %p497_p0 = pnand %p2435_p12, %p496_p13 }
  0x24   : > { %p546_p1 = scmp.lt.s32.totalorder (!%p497_p0), %s3151_s12, 1  ;;  %s3673_s22 = sld [smem:[#allocation12_spill]] (!%p497_p0)  ;;  %vm562_vm0 = vcmask (!%p497_p0), 261120   ;;  %v2861_v9 = vld [vmem:[%s3638_s5] sm:$0xff] (!%p497_p0)   ;;  %v3020_v10 = vmov (!%p497_p0), 0.0   ;;  %vm3021_vm1 = vmmov (!%p497_p0), 0   ;;  %v554_v45 = vlaneseq (!%p497_p0) }
  0x25   : > { %500 = sbr.rel (%p497_p0) target bundleno = 5560 (0x15b8), region = 88  ;;  %s3674_s25 = sld [smem:[#allocation11_spill]] (!%p497_p0)  ;;  %2618 = vmatprep.subr.bf16.mxu1 (!%p497_p0), %v3020_v10  ;;  %2622 = vmatprep.mubr.msk.bf16.mxu1 (!%p497_p0), %vm3021_vm1, %v3020_v10  ;;  %v2862_v11 = vld [vmem:[%s3638_s5 + $0x8] sm:$0xff] (!%p497_p0)   ;;  %v2439_v22 = vld [vmem:[%s3639_s6] ss:$0 sm:$0xff] (!%p497_p0)  ;;  %vm675_vm2 = vcmask (!%p497_p0), 64512  }
  0x26   : > { %2619 = vmatpush3.bf16.msra.mxu1 (!%p497_p0), %v2861_v9  ;;  %2632 = vmatprep.subr.bf16.mxu0 (!%p497_p0), %v3020_v10  ;;  %s3675_s3 = sld [smem:[#allocation13_spill]] (!%p497_p0)  ;;  %s3676_s4 = sld [smem:[#allocation14_spill]] (!%p497_p0)  ;;  %vm914_vm3 = vcmask (!%p497_p0), 1043456   ;;  %v3260_v46 = vshrl.u32 (!%p497_p0), %v554_v45, 7  ;;  %v557_v47 = vand.u32 (!%p497_p0), 127, %v554_v45  ;;  %v3027_v48 = vmov (!%p497_p0), -inf  }
  0x27   : > { %2620 = vmatprep.subr.bf16.mxu1 (!%p497_p0), %v3020_v10  ;;  %2634 = vmatprep.mubr.msk.bf16.mxu0 (!%p497_p0), %vm3021_vm1, %v3020_v10  ;;  %s3661_s30 = smov (!%p497_p0), 104   ;;  %s3657_s0 = smov (!%p497_p0), 64   ;;  %vm1123_vm5 = vcmask (!%p497_p0), 130048   ;;  %vm1125_vm6 = vcmask (!%p497_p0), 195584   ;;  %vm2362_vm8 = vcmask (!%p497_p0), 253952  }
  0x28   : > { %vm558_vm4 = vcmp.le.s32.totalorder (!%p497_p0), %v557_v47, %v3260_v46  ;;  %s3655_s23 = smov (!%p497_p0), 16   ;;  %s3654_s24 = smov (!%p497_p0), 24  }
  0x29   : > { %v3263_v49 = vsel (!%p497_p0), %vm558_vm4, 0.0, %v3027_v48 }
  0x2a   : > { %v552_v0 = vld [vmem:[%s3673_s22] sm:$0xff] (!%p497_p0)  ;;  %2621 = vmatpush3.bf16.msra.mxu1 (!%p497_p0), %v2862_v11  ;;  %s3656_s22 = smov (!%p497_p0), 8  }
  0x2b   : > { %2626 = vmatprep.subr.bf16.mxu1 (!%p497_p0), %v3020_v10 }
  0x2c   : > { %s547_s28 = scalar_select %p546_p1, %s3151_s12, 1  ;;  %v2437_v16 = vld [vmem:[%s3675_s3] ss:$0 sm:$0xff] }
  0x2d   : > { %v2438_v18 = vld [vmem:[%s3676_s4] ss:$0 sm:$0xff] }
  0x2e   : > { %s2436_s29 = sshll.u32 %s547_s28, 3  ;;  %s3678_s28 = smov 104  }
  0x2f   : > { %s549_s20 = scalar_lea.vmem %s3674_s25, %s2436_s29  ;;  %s3024_s25 = smov 112  }
  0x30   : > { %v551_v1 = vld [vmem:[%s549_s20] sm:$0xff]  ;;  %s3023_s20 = smov 120   ;;  %s3659_s29 = smov 96  }
  0x31   : > { %v3186_v2 = vadd.f32 %v552_v0, %v551_v1 }
  0x33   : > { %v563_v3 = vsel %vm562_vm0, %v3186_v2, 0.0 }
  0x34   : > { %564 = vadd.xlane.f32.xlu0 %v563_v3 }
  0xc1   : > { %v565_v4 = vpop.xlane.xlu0 %564 }
  0xc2   : > { %v567_v5 = vmul.f32 0.03125, %v565_v4 }
  0xc4   : > { %v568_v6 = vsub.f32 %v3186_v2, %v567_v5 }
  0xc6   : > { %v569_v7 = vmul.f32 %v568_v6, %v568_v6 }
  0xc8   : > { %v570_v8 = vsel %vm562_vm0, %v569_v7, 0.0 }
  0xc9   : > { %571 = vadd.xlane.f32.xlu0 %v570_v8 }
 0x156   : > { %v572_v12 = vpop.xlane.xlu0 %571 }
 0x157   : > { %v573_v13 = vmul.f32 0.03125, %v572_v12 }
 0x159   : > { %v574_v14 = vadd.f32 1e-05, %v573_v13 }
 0x15b   : > { %2891 = vrsqrt.f32 %v574_v14 }
 0x165   : > { %v2892_v15 = vpop.eup %2891 }
 0x166   : > { %v576_v17 = vmul.f32 %v2892_v15, %v568_v6 }
 0x168   : > { %v583_v19 = vmul.f32 %v2437_v16, %v576_v17 }
 0x16a   : > { %v590_v20 = vadd.f32 %v2438_v18, %v583_v19 }
 0x16c   : > { %v591_v21 = vpack.c.bf16 %v590_v20, %v590_v20 }
 0x16e   : > { %2623 = vmatmul.mubr.msk.bf16.vlgmr.msra.gmra.mrb[0].mxu1 %vm562_vm0, %v591_v21 }
 0x16f   : > { %2628 = vmatprep.mubr.msk.bf16.mxu1 %vm3021_vm1, %v3020_v10 }
 0x241   : > { %v652_v23 = vpop.f32.mrb[0].mxu1 }
 0x242   : > { %v653_v24 = vadd.f32 %v2439_v22, %v652_v23  ;;  %v2624_v25 = vpop.f32.mrb[1].mxu1 }
 0x243   : > { %v655_v26 = vpop.f32.mrb[2].mxu1 }
 0x244   : > { %665 = vrot.lane.b32.xlu0 %v653_v24, %s3661_s30  ;;  %659 = vrot.lane.b32.xlu1 %v653_v24, %s3023_s20  ;;  %v2625_v27 = vpop.f32.mrb[3].mxu1  ;;  %v668_v28 = vpack.c.bf16 %v653_v24, %v653_v24  ;;  %s3679_s30 = smov 96  }
 0x248   : > { %662 = vrot.lane.b32.xlu1 %v653_v24, %s3024_s25 }
 0x24c   : > { %673 = vrot.lane.b32.xlu1 %v668_v28, %s3659_s29 }
 0x2b6   : > { %v660_v29 = vpop.permute.xlu1 %659  ;;  %v666_v33 = vpop.permute.xlu0 %665 }
 0x2b7   : > { %v3222_v30 = vpack.c.bf16 %v660_v29, %v660_v29  ;;  %v3230_v35 = vpack.c.bf16 %v666_v33, %v666_v33 }
 0x2b9   : > { %723 = vrot.lane.b32.xlu1 %v3222_v30, %s3659_s29 }
 0x2ba   : > { %v663_v31 = vpop.permute.xlu1 %662 }
 0x2bb   : > { %v3226_v32 = vpack.c.bf16 %v663_v31, %v663_v31 }
 0x2bd   : > { %772 = vrot.lane.b32.xlu1 %v3226_v32, %s3659_s29 }
 0x2be   : > { %v674_v34 = vpop.permute.xlu1 %673 }
 0x2bf   : > { %v680_v36 = vsel %vm675_vm2, %v674_v34, 0 }
 0x2c0   : > { %2627 = vmatpush3.bf16.xpose.msra.mxu1 %v680_v36 }
 0x2c1   : > { %821 = vrot.lane.b32.xlu1 %v3230_v35, %s3659_s29  ;;  %2638 = vmatprep.subr.bf16.mxu1 %v3020_v10  ;;  %s2272_s29 = sld [smem:[#allocation3 + %s3151_s12]] }
 0x2c5   : > { %909 = vrot.lane.b32.xlu1 %v668_v28, %s3657_s0 }
 0x2c7   : > { %2629 = vmatmul.mubr.msk.bf16.vlgmr.msra.gmra.mrb[4].mxu1 %vm675_vm2, %v668_v28 }
 0x2c8   : > { %2640 = vmatprep.mubr.msk.bf16.mxu1 %vm3021_vm1, %v3020_v10 }
 0x32b   : > { %v724_v37 = vpop.permute.xlu1 %723 }
 0x32c   : > { %v729_v38 = vsel %vm675_vm2, %v724_v37, 0 }
 0x32d   : > { %2633 = vmatpush3.bf16.xpose.msra.mxu0 %v729_v38 }
 0x32e   : > { %2644 = vmatprep.subr.bf16.mxu0 %v3020_v10 }
 0x32f   : > { %v773_v39 = vpop.permute.xlu1 %772 }
 0x330   : > { %v778_v40 = vsel %vm675_vm2, %v773_v39, 0 }
 0x331   : > { %2639 = vmatpush3.bf16.xpose.msra.mxu1 %v778_v40 }
 0x332   : > { %2650 = vmatprep.subr.bf16.mxu1 %v3020_v10 }
 0x333   : > { %v822_v41 = vpop.permute.xlu1 %821 }
 0x334   : > { %v827_v42 = vsel %vm675_vm2, %v822_v41, 0  ;;  %2635 = vmatmul.mubr.msk.bf16.vlgmr.msra.gmra.mrb[0].mxu0 %vm675_vm2, %v3222_v30 }
 0x335   : > { %2645 = vmatpush3.bf16.xpose.msra.mxu0 %v827_v42  ;;  %2646 = vmatprep.mubr.msk.bf16.mxu0 %vm3021_vm1, %v3020_v10 }
 0x336   : > { %2656 = vmatprep.subr.bf16.mxu0 %v3020_v10 }
 0x337   : > { %v910_v43 = vpop.permute.xlu1 %909 }
 0x338   : > { %v916_v44 = vsel %vm914_vm3, %v910_v43, 0  ;;  %2641 = vmatmul.mubr.msk.bf16.vlgmr.msra.gmra.mrb[8].mxu1 %vm675_vm2, %v3226_v32 }
 0x339   : > { %2651 = vmatpush3.bf16.msra.mxu1 %v916_v44  ;;  %2652 = vmatprep.mubr.msk.bf16.mxu1 %vm3021_vm1, %v3020_v10 }
 0x33a   : > { %2662 = vmatprep.subr.bf16.mxu1 %v3020_v10 }
 0x33c   : > { %2647 = vmatmul.mubr.msk.bf16.vlgmr.msra.gmra.mrb[4].mxu0 %vm675_vm2, %v3230_v35 }
 0x33d   : > { %2658 = vmatprep.mubr.msk.bf16.mxu0 %vm3021_vm1, %v3020_v10 }
 0x39a   : > { %v716_v50 = vpop.f32.mrb[4].mxu1 }
 0x39b   : > { %v717_v51 = vadd.f32 %v716_v50, %v3263_v49  ;;  %v2630_v52 = vpop.f32.mrb[5].mxu1  ;;  %v2863_v50 = vld [vmem:[%s3640_s7] sm:$0xff]  }
 0x39c   : > { %v719_v53 = vpop.f32.mrb[6].mxu1  ;;  %v2864_v52 = vld [vmem:[%s3640_s7 + $0x8] sm:$0xff]  }
 0x39d   : > { %v2631_v54 = vpop.f32.mrb[7].mxu1  ;;  %v869_v55 = vsel %vm675_vm2, %v717_v51, -inf }
 0x39e   : > { %870 = vmax.xlane.f32.xlu1 %v869_v55 }
 0x407   : > { %v765_v56 = vpop.f32.mrb[0].mxu0 }
 0x408   : > { %v766_v57 = vadd.f32 %v765_v56, %v3263_v49  ;;  %v2636_v58 = vpop.f32.mrb[1].mxu0 }
 0x409   : > { %v768_v59 = vpop.f32.mrb[2].mxu0 }
 0x40a   : > { %v2637_v60 = vpop.f32.mrb[3].mxu0  ;;  %v872_v61 = vsel %vm675_vm2, %v766_v57, -inf }
 0x40b   : > { %873 = vmax.xlane.f32.xlu0 %v872_v61  ;;  %v814_v62 = vpop.f32.mrb[8].mxu1 }
 0x40c   : > { %v815_v63 = vadd.f32 %v814_v62, %v3263_v49  ;;  %v2642_v0 = vpop.f32.mrb[9].mxu1 }
 0x40d   : > { %v817_v1 = vpop.f32.mrb[10].mxu1 }
 0x40e   : > { %v2643_v3 = vpop.f32.mrb[11].mxu1  ;;  %v875_v4 = vsel %vm675_vm2, %v815_v63, -inf }
 0x40f   : > { %v863_v5 = vpop.f32.mrb[4].mxu0  ;;  %876 = vmax.xlane.f32.xlu1 %v875_v4 }
 0x410   : > { %v864_v6 = vadd.f32 %v863_v5, %v3263_v49  ;;  %v2648_v7 = vpop.f32.mrb[5].mxu0 }
 0x411   : > { %v866_v8 = vpop.f32.mrb[6].mxu0 }
 0x412   : > { %v2649_v9 = vpop.f32.mrb[7].mxu0  ;;  %v878_v11 = vsel %vm675_vm2, %v864_v6, -inf }
 0x413   : > { %879 = vmax.xlane.f32.xlu0 %v878_v11 }
 0x420   : > { %1006 = vrot.lane.b32.xlu1 %v3226_v32, %s3657_s0 }
 0x424   : > { %1054 = vrot.lane.b32.xlu1 %v3230_v35, %s3657_s0 }
 0x429   : > { %958 = vrot.lane.b32.xlu0 %v3222_v30, %s3657_s0  ;;  %s3681_s0 = smov 8  }
 0x42b   : > { %v871_v12 = vpop.xlane.xlu1 %870 }
 0x42c   : > { %v881_v13 = vsub.f32 %v717_v51, %v871_v12 }
 0x42e   : > { %v885_v14 = vmul.f32 1.442695, %v881_v13 }
 0x430   : > { %2893 = vpow2.f32 %v885_v14 }
 0x43a   : > { %v2894_v15 = vpop.eup %2893 }
 0x43b   : > { %v905_v16 = vpack.c.bf16 %v2894_v15, %v2894_v15  ;;  %v893_v41 = vsel %vm675_vm2, %v2894_v15, 0.0 }
 0x43d   : > { %2653 = vmatmul.mubr.msk.bf16.vlgmr.msra.gmra.mrb[12].mxu1 %vm675_vm2, %v905_v16 }
 0x43e   : > { %2664 = vmatprep.mubr.msk.bf16.mxu1 %vm3021_vm1, %v3020_v10 }
 0x498   : > { %v874_v17 = vpop.xlane.xlu0 %873 }
 0x499   : > { %v882_v18 = vsub.f32 %v766_v57, %v874_v17 }
 0x49b   : > { %v887_v19 = vmul.f32 1.442695, %v882_v18 }
 0x49c   : > { %v877_v20 = vpop.xlane.xlu1 %876 }
 0x49d   : > { %2895 = vpow2.f32 %v887_v19  ;;  %v883_v21 = vsub.f32 %v815_v63, %v877_v20  ;;  %v2454_v20 = vld [vmem:[%s3641_s8] ss:$0 sm:$0xff] }
 0x49f   : > { %v889_v22 = vmul.f32 1.442695, %v883_v21 }
 0x4a0   : > { %v880_v23 = vpop.xlane.xlu0 %879  ;;  %v1007_v24 = vpop.permute.xlu1 %1006 }
 0x4a1   : > { %2897 = vpow2.f32 %v889_v22  ;;  %v884_v25 = vsub.f32 %v864_v6, %v880_v23  ;;  %v1012_v26 = vsel %vm914_vm3, %v1007_v24, 0 }
 0x4a2   : > { %2663 = vmatpush3.bf16.msra.mxu1 %v1012_v26 }
 0x4a3   : > { %v891_v27 = vmul.f32 1.442695, %v884_v25  ;;  %2674 = vmatprep.subr.bf16.mxu1 %v3020_v10 }
 0x4a4   : > { %v959_v28 = vpop.permute.xlu0 %958  ;;  %v1055_v31 = vpop.permute.xlu1 %1054 }
 0x4a5   : > { %2899 = vpow2.f32 %v891_v27  ;;  %v964_v29 = vsel %vm914_vm3, %v959_v28, 0  ;;  %v1060_v34 = vsel %vm914_vm3, %v1055_v31, 0 }
 0x4a6   : > { %2657 = vmatpush3.bf16.msra.mxu0 %v964_v29 }
 0x4a7   : > { %v2896_v30 = vpop.eup %2895  ;;  %2668 = vmatprep.subr.bf16.mxu0 %v3020_v10 }
 0x4a8   : > { %v896_v32 = vsel %vm675_vm2, %v2896_v30, 0.0  ;;  %v906_v33 = vpack.c.bf16 %v2896_v30, %v2896_v30 }
 0x4a9   : > { %897 = vadd.xlane.f32.xlu0 %v896_v32  ;;  %v2866_v32 = vld [vmem:[%s3644_s11 + $0x8] sm:$0xff]  }
 0x4aa   : > { %2659 = vmatmul.mubr.msk.bf16.vlgmr.msra.gmra.mrb[8].mxu0 %vm675_vm2, %v906_v33 }
 0x4ab   : > { %v2898_v35 = vpop.eup %2897  ;;  %2669 = vmatpush3.bf16.msra.mxu0 %v1060_v34  ;;  %2670 = vmatprep.mubr.msk.bf16.mxu0 %vm3021_vm1, %v3020_v10 }
 0x4ac   : > { %v899_v36 = vsel %vm675_vm2, %v2898_v35, 0.0  ;;  %v907_v37 = vpack.c.bf16 %v2898_v35, %v2898_v35  ;;  %2682 = vmatprep.subr.bf16.mxu0 %v3020_v10 }
 0x4ad   : > { %900 = vadd.xlane.f32.xlu1 %v899_v36 }
 0x4ae   : > { %2665 = vmatmul.mubr.msk.bf16.vlgmr.msra.gmra.mrb[16].mxu1 %vm675_vm2, %v907_v37  ;;  %v2455_v37 = vld [vmem:[%s3642_s9] ss:$0 sm:$0xff] }
 0x4af   : > { %v2900_v38 = vpop.eup %2899  ;;  %2678 = vmatprep.mubr.msk.bf16.mxu1 %vm3021_vm1, %v3020_v10  ;;  %2675 = vmatpush3.bf16.msra.mxu1 %v2863_v50  ;;  %v2872_v50 = vld [vmem:[%s3646_s13 + $0x28] sm:$0xff]  }
 0x4b0   : > { %v902_v39 = vsel %vm675_vm2, %v2900_v38, 0.0  ;;  %v908_v40 = vpack.c.bf16 %v2900_v38, %v2900_v38  ;;  %2676 = vmatprep.subr.bf16.mxu1 %v3020_v10 }
 0x4b1   : > { %903 = vadd.xlane.f32.xlu0 %v902_v39  ;;  %v2456_v39 = vld [vmem:[%s3643_s10] ss:$0 sm:$0xff] }
 0x4b2   : > { %2671 = vmatmul.mubr.msk.bf16.vlgmr.msra.gmra.mrb[12].mxu0 %vm675_vm2, %v908_v40 }
 0x4b3   : > { %2686 = vmatprep.mubr.msk.bf16.mxu0 %vm3021_vm1, %v3020_v10  ;;  %2677 = vmatpush3.bf16.msra.mxu1 %v2864_v52  ;;  %v2874_v52 = vld [vmem:[%s3646_s13 + $0x38] sm:$0xff]  }
 0x4b4   : > { %2690 = vmatprep.subr.bf16.mxu1 %v3020_v10 }
 0x4b5   : > { %894 = vadd.xlane.f32.xlu0 %v893_v41 }
 0x510   : > { %v952_v42 = vpop.f32.mrb[12].mxu1 }
 0x511   : > { %v2654_v43 = vpop.f32.mrb[13].mxu1 }
 0x512   : > { %v955_v44 = vpop.f32.mrb[14].mxu1  ;;  %v2867_v43 = vld [vmem:[%s3646_s13] sm:$0xff]  }
 0x513   : > { %v2655_v45 = vpop.f32.mrb[15].mxu1  ;;  %v2868_v44 = vld [vmem:[%s3646_s13 + $0x8] sm:$0xff]  }
 0x514   : > { %v2869_v45 = vld [vmem:[%s3646_s13 + $0x10] sm:$0xff]  }
 0x536   : > { %v898_v47 = vpop.xlane.xlu0 %897 }
 0x537   : > { %2901 = vrcp.f32 %v898_v47  ;;  %v2870_v47 = vld [vmem:[%s3646_s13 + $0x18] sm:$0xff]  }
 0x53a   : > { %v901_v48 = vpop.xlane.xlu1 %900 }
 0x53b   : > { %2903 = vrcp.f32 %v901_v48  ;;  %v2871_v48 = vld [vmem:[%s3646_s13 + $0x20] sm:$0xff]  }
 0x53e   : > { %v904_v51 = vpop.xlane.xlu0 %903 }
 0x53f   : > { %2905 = vrcp.f32 %v904_v51  ;;  %v2873_v51 = vld [vmem:[%s3646_s13 + $0x30] sm:$0xff]  }
 0x541   : > { %v2902_v53 = vpop.eup %2901 }
 0x542   : > { %v895_v8 = vpop.xlane.xlu0 %894 }
 0x543   : > { %2907 = vrcp.f32 %v895_v8 }
 0x545   : > { %v2904_v59 = vpop.eup %2903 }
 0x549   : > { %v2906_v1 = vpop.eup %2905 }
 0x54d   : > { %v2908_v9 = vpop.eup %2907 }
 0x54e   : > { %v1106_v12 = vmul.f32 %v2908_v9, %v952_v42 }
 0x57d   : > { %v1000_v54 = vpop.f32.mrb[8].mxu0 }
 0x57e   : > { %v1107_v55 = vmul.f32 %v2902_v53, %v1000_v54  ;;  %v2660_v56 = vpop.f32.mrb[9].mxu0 }
 0x57f   : > { %v1003_v57 = vpop.f32.mrb[10].mxu0 }
 0x580   : > { %v2661_v58 = vpop.f32.mrb[11].mxu0  ;;  %1111 = vrot.lane.b32.xlu1 %v1107_v55, %s3656_s22 }
 0x581   : > { %v1048_v60 = vpop.f32.mrb[16].mxu1 }
 0x582   : > { %v1108_v61 = vmul.f32 %v2904_v59, %v1048_v60  ;;  %v2666_v62 = vpop.f32.mrb[17].mxu1 }
 0x583   : > { %v1051_v63 = vpop.f32.mrb[18].mxu1 }
 0x584   : > { %1115 = vrot.lane.b32.xlu0 %v1108_v61, %s3655_s23  ;;  %v2667_v0 = vpop.f32.mrb[19].mxu1 }
 0x585   : > { %v1096_v3 = vpop.f32.mrb[12].mxu0 }
 0x586   : > { %v1109_v4 = vmul.f32 %v2906_v1, %v1096_v3  ;;  %v2672_v5 = vpop.f32.mrb[13].mxu0  ;;  %v2462_v3 = vld [vmem:[%s3647_s14] ss:$0 sm:$0xff] }
 0x587   : > { %v1099_v6 = vpop.f32.mrb[14].mxu0 }
 0x588   : > { %1119 = vrot.lane.b32.xlu1 %v1109_v4, %s3654_s24  ;;  %v2673_v7 = vpop.f32.mrb[15].mxu0  ;;  %s3677_s24 = sld [smem:[#allocation15_spill]] }
 0x58e   : > { %v2457_v53 = vld [vmem:[%s3677_s24] ss:$0 sm:$0xff] }
 0x5f2   : > { %v1112_v11 = vpop.permute.xlu1 %1111 }
 0x5f3   : > { %v1122_v14 = vsel %vm675_vm2, %v1106_v12, %v1112_v11 }
 0x5f6   : > { %v1116_v13 = vpop.permute.xlu0 %1115 }
 0x5f7   : > { %v1124_v15 = vsel %vm1123_vm5, %v1122_v14, %v1116_v13 }
 0x5fa   : > { %v1120_v16 = vpop.permute.xlu1 %1119 }
 0x5fb   : > { %v1126_v17 = vsel %vm1125_vm6, %v1124_v15, %v1120_v16 }
 0x5fc   : > { %v1127_v18 = vpack.c.bf16 %v1126_v17, %v1126_v17  ;;  %v2875_v17 = vld [vmem:[%s3638_s5 + $0x10] sm:$0xff]  }
 0x5fe   : > { %2679 = vmatmul.mubr.msk.bf16.vlgmr.msra.gmra.mrb[20].mxu1 %vm562_vm0, %v1127_v18  ;;  %v2876_v18 = vld [vmem:[%s3638_s5 + $0x18] sm:$0xff]  }
 0x5ff   : > { %2706 = vmatprep.mubr.msk.bf16.mxu1 %vm3021_vm1, %v3020_v10  ;;  %2691 = vmatpush3.bf16.msra.mxu1 %v2867_v43 }
 0x600   : > { %2692 = vmatprep.subr.bf16.mxu1 %v3020_v10 }
 0x603   : > { %2693 = vmatpush3.bf16.msra.mxu1 %v2868_v44 }
 0x604   : > { %2694 = vmatprep.subr.bf16.mxu1 %v3020_v10 }
 0x607   : > { %2695 = vmatpush3.bf16.msra.mxu1 %v2869_v45 }
 0x608   : > { %2696 = vmatprep.subr.bf16.mxu1 %v3020_v10 }
 0x60b   : > { %2697 = vmatpush3.bf16.msra.mxu1 %v2870_v47 }
 0x60c   : > { %2698 = vmatprep.subr.bf16.mxu1 %v3020_v10 }
 0x60f   : > { %2699 = vmatpush3.bf16.msra.mxu1 %v2871_v48 }
 0x610   : > { %2700 = vmatprep.subr.bf16.mxu1 %v3020_v10 }
 0x613   : > { %2701 = vmatpush3.bf16.msra.mxu1 %v2872_v50 }
 0x614   : > { %2702 = vmatprep.subr.bf16.mxu1 %v3020_v10 }
 0x617   : > { %2703 = vmatpush3.bf16.msra.mxu1 %v2873_v51 }
 0x618   : > { %2704 = vmatprep.subr.bf16.mxu1 %v3020_v10 }
 0x61b   : > { %2705 = vmatpush3.bf16.msra.mxu1 %v2874_v52 }
 0x61c   : > { %2736 = vmatprep.subr.bf16.mxu1 %v3020_v10 }
 0x6d1   : > { %v1181_v19 = vpop.f32.mrb[20].mxu1 }
 0x6d2   : > { %v1187_v21 = vadd.f32 %v1181_v19, %v3186_v2  ;;  %v2680_v22 = vpop.f32.mrb[21].mxu1  ;;  %v2865_v2 = vld [vmem:[%s3644_s11] sm:$0xff]  }
 0x6d3   : > { %v1184_v23 = vpop.f32.mrb[22].mxu1  ;;  %2683 = vmatpush3.bf16.msra.mxu0 %v2865_v2 }
 0x6d4   : > { %v3322_v24 = vadd.f32 %v2454_v20, %v1187_v21  ;;  %v2681_v25 = vpop.f32.mrb[23].mxu1  ;;  %2684 = vmatprep.subr.bf16.mxu0 %v3020_v10  ;;  %v2473_v23 = vld [vmem:[%s3675_s3 + $0x1] ss:$0 sm:$0xff] }
 0x6d5   : > { %v2474_v25 = vld [vmem:[%s3676_s4 + $0x1] ss:$0 sm:$0xff] }
 0x6d6   : > { %v1198_v26 = vsel %vm562_vm0, %v3322_v24, 0.0 }
 0x6d7   : > { %1199 = vadd.xlane.f32.xlu1 %v1198_v26  ;;  %2685 = vmatpush3.bf16.msra.mxu0 %v2866_v32 }
 0x6d8   : > { %2710 = vmatprep.subr.bf16.mxu0 %v3020_v10 }
 0x764   : > { %v1200_v27 = vpop.xlane.xlu1 %1199 }
 0x765   : > { %v1201_v28 = vmul.f32 0.03125, %v1200_v27 }
 0x767   : > { %v1202_v29 = vsub.f32 %v3322_v24, %v1201_v28 }
 0x769   : > { %v1203_v30 = vmul.f32 %v1202_v29, %v1202_v29 }
 0x76b   : > { %v1204_v31 = vsel %vm562_vm0, %v1203_v30, 0.0 }
 0x76c   : > { %1205 = vadd.xlane.f32.xlu0 %v1204_v31 }
 0x7f9   : > { %v1206_v33 = vpop.xlane.xlu0 %1205 }
 0x7fa   : > { %v1207_v34 = vmul.f32 0.03125, %v1206_v33 }
 0x7fc   : > { %v1208_v35 = vadd.f32 1e-05, %v1207_v34 }
 0x7fe   : > { %2909 = vrsqrt.f32 %v1208_v35 }
 0x808   : > { %v2910_v36 = vpop.eup %2909 }
 0x809   : > { %v1210_v38 = vmul.f32 %v2910_v36, %v1202_v29  ;;  %v2480_v29 = vld [vmem:[%s3639_s6 + $0x1] ss:$0 sm:$0xff] }
 0x80b   : > { %v1217_v40 = vmul.f32 %v2455_v37, %v1210_v38 }
 0x80d   : > { %v1224_v41 = vadd.f32 %v2456_v39, %v1217_v40 }
 0x80f   : > { %v1225_v42 = vpack.c.bf16 %v1224_v41, %v1224_v41 }
 0x811   : > { %2687 = vmatmul.mubr.msk.bf16.vlgmr.msra.gmra.mrb[16].mxu0 %vm562_vm0, %v1225_v42 }
 0x812   : > { %2714 = vmatprep.mubr.msk.bf16.mxu0 %vm3021_vm1, %v3020_v10  ;;  %2711 = vmatpush3.bf16.msra.mxu0 %v2875_v17 }
 0x813   : > { %2712 = vmatprep.subr.bf16.mxu0 %v3020_v10 }
 0x816   : > { %2713 = vmatpush3.bf16.msra.mxu0 %v2876_v18 }
 0x817   : > { %2718 = vmatprep.subr.bf16.mxu0 %v3020_v10 }
 0x8e4   : > { %v1286_v54 = vpop.f32.mrb[16].mxu0 }
 0x8e5   : > { %v1287_v55 = vadd.f32 %v2457_v53, %v1286_v54  ;;  %v2688_v56 = vpop.f32.mrb[17].mxu0 }
 0x8e6   : > { %v1289_v57 = vpop.f32.mrb[18].mxu0 }
 0x8e7   : > { %v2461_v58 = vmul.f32 -1.702, %v1287_v55  ;;  %v2689_v59 = vpop.f32.mrb[19].mxu0 }
 0x8e9   : > { %v1294_v60 = vmul.f32 1.442695, %v2461_v58 }
 0x8eb   : > { %2911 = vpow2.f32 %v1294_v60 }
 0x8f5   : > { %v2912_v61 = vpop.eup %2911 }
 0x8f6   : > { %v1296_v62 = vadd.f32 1.0, %v2912_v61 }
 0x8f8   : > { %2913 = vrcp.f32 %v1296_v62 }
 0x902   : > { %v2914_v63 = vpop.eup %2913 }
 0x903   : > { %v1299_v0 = vmul.f32 %v2914_v63, %v1287_v55 }
 0x905   : > { %v1300_v1 = vpack.c.bf16 %v1299_v0, %v1299_v0 }
 0x907   : > { %2707 = vmatmul.mubr.bf16.vlgmr.msra.gmra.mrb[24].mxu1 %v1300_v1 }
 0x908   : > { %2738 = vmatprep.mubr.msk.bf16.mxu1 %vm3021_vm1, %v3020_v10 }
 0x9da   : > { %v1406_v4 = vpop.f32.mrb[24].mxu1 }
 0x9db   : > { %v1407_v5 = vadd.f32 %v2462_v3, %v1406_v4  ;;  %v2708_v6 = vpop.f32.mrb[25].mxu1 }
 0x9dc   : > { %v1409_v7 = vpop.f32.mrb[26].mxu1 }
 0x9dd   : > { %v3386_v8 = vadd.f32 %v1407_v5, %v3322_v24  ;;  %v2709_v9 = vpop.f32.mrb[27].mxu1 }
 0x9df   : > { %v1417_v11 = vsel %vm562_vm0, %v3386_v8, 0.0 }
 0x9e0   : > { %1418 = vadd.xlane.f32.xlu0 %v1417_v11 }
 0xa6d   : > { %v1419_v12 = vpop.xlane.xlu0 %1418 }
 0xa6e   : > { %v1420_v13 = vmul.f32 0.03125, %v1419_v12 }
 0xa70   : > { %v1421_v14 = vsub.f32 %v3386_v8, %v1420_v13 }
 0xa72   : > { %v1422_v15 = vmul.f32 %v1421_v14, %v1421_v14 }
 0xa74   : > { %v1423_v16 = vsel %vm562_vm0, %v1422_v15, 0.0 }
 0xa75   : > { %1424 = vadd.xlane.f32.xlu1 %v1423_v16 }
 0xb02   : > { %v1425_v19 = vpop.xlane.xlu1 %1424 }
 0xb03   : > { %v1426_v20 = vmul.f32 0.03125, %v1425_v19 }
 0xb05   : > { %v1427_v21 = vadd.f32 1e-05, %v1426_v20 }
 0xb07   : > { %2915 = vrsqrt.f32 %v1427_v21 }
 0xb11   : > { %v2916_v22 = vpop.eup %2915 }
 0xb12   : > { %v1429_v24 = vmul.f32 %v2916_v22, %v1421_v14 }
 0xb14   : > { %v1436_v26 = vmul.f32 %v2473_v23, %v1429_v24 }
 0xb16   : > { %v1443_v27 = vadd.f32 %v2474_v25, %v1436_v26 }
 0xb18   : > { %v1444_v28 = vpack.c.bf16 %v1443_v27, %v1443_v27 }
 0xb1a   : > { %2715 = vmatmul.mubr.msk.bf16.vlgmr.msra.gmra.mrb[20].mxu0 %vm562_vm0, %v1444_v28 }
 0xb1b   : > { %2720 = vmatprep.mubr.msk.bf16.mxu0 %vm3021_vm1, %v3020_v10 }
 0xbed   : > { %v1507_v30 = vpop.f32.mrb[20].mxu0 }
 0xbee   : > { %v1508_v31 = vadd.f32 %v2480_v29, %v1507_v30  ;;  %v2716_v2 = vpop.f32.mrb[21].mxu0 }
 0xbef   : > { %v1510_v32 = vpop.f32.mrb[22].mxu0 }
 0xbf0   : > { %1517 = vrot.lane.b32.xlu1 %v1508_v31, %s3024_s25  ;;  %1514 = vrot.lane.b32.xlu0 %v1508_v31, %s3023_s20  ;;  %v2717_v33 = vpop.f32.mrb[23].mxu0  ;;  %v1523_v34 = vpack.c.bf16 %v1508_v31, %v1508_v31  ;;  %s3680_s20 = smov 64  }
 0xbf4   : > { %1520 = vrot.lane.b32.xlu1 %v1508_v31, %s3678_s28  ;;  %1528 = vrot.lane.b32.xlu0 %v1523_v34, %s3679_s30  ;;  %s3682_s28 = smov 16  }
 0xc62   : > { %v1518_v35 = vpop.permute.xlu1 %1517  ;;  %v1515_v36 = vpop.permute.xlu0 %1514 }
 0xc63   : > { %v3416_v37 = vpack.c.bf16 %v1518_v35, %v1518_v35  ;;  %v3418_v38 = vpack.c.bf16 %v1515_v36, %v1515_v36 }
 0xc65   : > { %1577 = vrot.lane.b32.xlu1 %v3418_v38, %s3679_s30  ;;  %1626 = vrot.lane.b32.xlu0 %v3416_v37, %s3679_s30 }
 0xc66   : > { %v1521_v39 = vpop.permute.xlu1 %1520  ;;  %v1529_v40 = vpop.permute.xlu0 %1528 }
 0xc67   : > { %v1526_v41 = vpack.c.bf16 %v1521_v39, %v1521_v39  ;;  %v1534_v42 = vsel %vm675_vm2, %v1529_v40, 0 }
 0xc68   : > { %2719 = vmatpush3.bf16.xpose.msra.mxu0 %v1534_v42 }
 0xc69   : > { %1675 = vrot.lane.b32.xlu1 %v1526_v41, %s3679_s30  ;;  %2724 = vmatprep.subr.bf16.mxu0 %v3020_v10  ;;  %s3683_s30 = smov 24  }
 0xc6d   : > { %1763 = vrot.lane.b32.xlu1 %v1523_v34, %s3680_s20 }
 0xc6f   : > { %2721 = vmatmul.mubr.msk.bf16.vlgmr.msra.gmra.mrb[24].mxu0 %vm675_vm2, %v1523_v34 }
 0xc70   : > { %2726 = vmatprep.mubr.msk.bf16.mxu0 %vm3021_vm1, %v3020_v10 }
 0xcd7   : > { %v1578_v43 = vpop.permute.xlu1 %1577  ;;  %v1627_v48 = vpop.permute.xlu0 %1626 }
 0xcd8   : > { %v1583_v44 = vsel %vm675_vm2, %v1578_v43, 0  ;;  %v1632_v50 = vsel %vm675_vm2, %v1627_v48, 0 }
 0xcd9   : > { %2725 = vmatpush3.bf16.xpose.msra.mxu0 %v1583_v44 }
 0xcda   : > { %2730 = vmatprep.subr.bf16.mxu0 %v3020_v10 }
 0xcdb   : > { %v1676_v45 = vpop.permute.xlu1 %1675 }
 0xcdc   : > { %v1681_v47 = vsel %vm675_vm2, %v1676_v45, 0 }
 0xcdd   : > { %2737 = vmatpush3.bf16.xpose.msra.mxu1 %v1681_v47 }
 0xcde   : > { %2748 = vmatprep.subr.bf16.mxu1 %v3020_v10 }
 0xcdf   : > { %v1764_v51 = vpop.permute.xlu1 %1763 }
 0xce0   : > { %2727 = vmatmul.mubr.msk.bf16.vlgmr.msra.gmra.mrb[28].mxu0 %vm675_vm2, %v3418_v38  ;;  %v1769_v52 = vsel %vm914_vm3, %v1764_v51, 0  ;;  %v2877_v51 = vld [vmem:[%s3640_s7 + $0x10] sm:$0xff]  }
 0xce1   : > { %2731 = vmatpush3.bf16.xpose.msra.mxu0 %v1632_v50  ;;  %2732 = vmatprep.mubr.msk.bf16.mxu0 %vm3021_vm1, %v3020_v10 }
 0xce2   : > { %2742 = vmatprep.subr.bf16.mxu0 %v3020_v10 }
 0xce4   : > { %2739 = vmatmul.mubr.msk.bf16.vlgmr.msra.gmra.mrb[28].mxu1 %vm675_vm2, %v1526_v41 }
 0xce5   : > { %2750 = vmatprep.mubr.msk.bf16.mxu1 %vm3021_vm1, %v3020_v10 }
 0xce8   : > { %2733 = vmatmul.mubr.msk.bf16.vlgmr.msra.gmra.mrb[32].mxu0 %vm675_vm2, %v3416_v37 }
 0xce9   : > { %2743 = vmatpush3.bf16.msra.mxu0 %v1769_v52  ;;  %2744 = vmatprep.mubr.msk.bf16.mxu0 %vm3021_vm1, %v3020_v10 }
 0xcea   : > { %2754 = vmatprep.subr.bf16.mxu0 %v3020_v10 }
 0xd42   : > { %v1570_v53 = vpop.f32.mrb[24].mxu0 }
 0xd43   : > { %v1571_v54 = vadd.f32 %v1570_v53, %v3263_v49  ;;  %v2722_v55 = vpop.f32.mrb[25].mxu0 }
 0xd44   : > { %v1573_v56 = vpop.f32.mrb[26].mxu0 }
 0xd45   : > { %v2723_v57 = vpop.f32.mrb[27].mxu0  ;;  %v1723_v58 = vsel %vm675_vm2, %v1571_v54, -inf }
 0xd46   : > { %1724 = vmax.xlane.f32.xlu0 %v1723_v58 }
 0xdb3   : > { %v1619_v59 = vpop.f32.mrb[28].mxu0 }
 0xdb4   : > { %v1620_v60 = vadd.f32 %v1619_v59, %v3263_v49  ;;  %v2728_v61 = vpop.f32.mrb[29].mxu0 }
 0xdb5   : > { %v1622_v62 = vpop.f32.mrb[30].mxu0 }
 0xdb6   : > { %v2729_v63 = vpop.f32.mrb[31].mxu0  ;;  %v1726_v0 = vsel %vm675_vm2, %v1620_v60, -inf }
 0xdb7   : > { %1727 = vmax.xlane.f32.xlu1 %v1726_v0  ;;  %v1717_v1 = vpop.f32.mrb[28].mxu1 }
 0xdb8   : > { %v1718_v3 = vadd.f32 %v1717_v1, %v3263_v49  ;;  %v2740_v4 = vpop.f32.mrb[29].mxu1 }
 0xdb9   : > { %v1720_v5 = vpop.f32.mrb[30].mxu1 }
 0xdba   : > { %v2741_v6 = vpop.f32.mrb[31].mxu1  ;;  %v1732_v7 = vsel %vm675_vm2, %v1718_v3, -inf }
 0xdbb   : > { %v1668_v9 = vpop.f32.mrb[32].mxu0  ;;  %1733 = vmax.xlane.f32.xlu0 %v1732_v7 }
 0xdbc   : > { %v1669_v11 = vadd.f32 %v1668_v9, %v3263_v49  ;;  %v2734_v12 = vpop.f32.mrb[33].mxu0 }
 0xdbd   : > { %v1671_v13 = vpop.f32.mrb[34].mxu0 }
 0xdbe   : > { %v2735_v14 = vpop.f32.mrb[35].mxu0  ;;  %v1729_v15 = vsel %vm675_vm2, %v1669_v11, -inf }
 0xdbf   : > { %1730 = vmax.xlane.f32.xlu0 %v1729_v15 }
 0xdc8   : > { %1859 = vrot.lane.b32.xlu1 %v3416_v37, %s3680_s20 }
 0xdcc   : > { %1907 = vrot.lane.b32.xlu1 %v1526_v41, %s3680_s20 }
 0xdd3   : > { %v1725_v16 = vpop.xlane.xlu0 %1724 }
 0xdd4   : > { %v1735_v17 = vsub.f32 %v1571_v54, %v1725_v16  ;;  %v2878_v54 = vld [vmem:[%s3640_s7 + $0x18] sm:$0xff]  }
 0xdd5   : > { %1811 = vrot.lane.b32.xlu0 %v3418_v38, %s3680_s20  ;;  %s2544_s20 = sshll.u32 %s3151_s12, 4  ;;  %s3031_s12 = smov [#allocation4]  }
 0xdd6   : > { %v1739_v18 = vmul.f32 1.442695, %v1735_v17  ;;  %s3591_s23 = scalar_lea.hbm %s3651_s18, %s2544_s20 }
 0xdd8   : > { %2917 = vpow2.f32 %v1739_v18 }
 0xde2   : > { %v2918_v19 = vpop.eup %2917 }
 0xde3   : > { %v1759_v49 = vpack.c.bf16 %v2918_v19, %v2918_v19  ;;  %v1747_v40 = vsel %vm675_vm2, %v2918_v19, 0.0 }
 0xde5   : > { %2745 = vmatmul.mubr.msk.bf16.vlgmr.msra.gmra.mrb[36].mxu0 %vm675_vm2, %v1759_v49 }
 0xde6   : > { %2756 = vmatprep.mubr.msk.bf16.mxu0 %vm3021_vm1, %v3020_v10 }
 0xe44   : > { %v1728_v20 = vpop.xlane.xlu1 %1727 }
 0xe45   : > { %v1736_v21 = vsub.f32 %v1620_v60, %v1728_v20 }
 0xe47   : > { %v1741_v22 = vmul.f32 1.442695, %v1736_v21 }
 0xe48   : > { %v1860_v23 = vpop.permute.xlu1 %1859  ;;  %v1734_v24 = vpop.xlane.xlu0 %1733 }
 0xe49   : > { %2919 = vpow2.f32 %v1741_v22  ;;  %v1865_v25 = vsel %vm914_vm3, %v1860_v23, 0  ;;  %v1738_v26 = vsub.f32 %v1718_v3, %v1734_v24  ;;  %v2500_v22 = vld [vmem:[%s3641_s8 + $0x1] ss:$0 sm:$0xff] }
 0xe4a   : > { %2755 = vmatpush3.bf16.msra.mxu0 %v1865_v25 }
 0xe4b   : > { %v1745_v27 = vmul.f32 1.442695, %v1738_v26  ;;  %2766 = vmatprep.subr.bf16.mxu0 %v3020_v10 }
 0xe4c   : > { %v1731_v28 = vpop.xlane.xlu0 %1730  ;;  %v1908_v33 = vpop.permute.xlu1 %1907 }
 0xe4d   : > { %2921 = vpow2.f32 %v1745_v27  ;;  %v1737_v29 = vsub.f32 %v1669_v11, %v1731_v28  ;;  %v1913_v36 = vsel %vm914_vm3, %v1908_v33, 0  ;;  %v2880_v33 = vld [vmem:[%s3644_s11 + $0x18] sm:$0xff]  }
 0xe4f   : > { %v1743_v30 = vmul.f32 1.442695, %v1737_v29 }
 0xe50   : > { %v1812_v31 = vpop.permute.xlu0 %1811 }
 0xe51   : > { %2923 = vpow2.f32 %v1743_v30  ;;  %v1817_v2 = vsel %vm914_vm3, %v1812_v31, 0 }
 0xe52   : > { %2749 = vmatpush3.bf16.msra.mxu1 %v1817_v2 }
 0xe53   : > { %v2920_v32 = vpop.eup %2919  ;;  %2760 = vmatprep.subr.bf16.mxu1 %v3020_v10 }
 0xe54   : > { %v1750_v34 = vsel %vm675_vm2, %v2920_v32, 0.0  ;;  %v1760_v35 = vpack.c.bf16 %v2920_v32, %v2920_v32 }
 0xe55   : > { %1751 = vadd.xlane.f32.xlu0 %v1750_v34 }
 0xe56   : > { %2751 = vmatmul.mubr.msk.bf16.vlgmr.msra.gmra.mrb[32].mxu1 %vm675_vm2, %v1760_v35 }
 0xe57   : > { %v2922_v37 = vpop.eup %2921  ;;  %2761 = vmatpush3.bf16.msra.mxu1 %v1913_v36  ;;  %2762 = vmatprep.mubr.msk.bf16.mxu1 %vm3021_vm1, %v3020_v10 }
 0xe58   : > { %v1756_v38 = vsel %vm675_vm2, %v2922_v37, 0.0  ;;  %2774 = vmatprep.subr.bf16.mxu1 %v3020_v10  ;;  %v1762_v43 = vpack.c.bf16 %v2922_v37, %v2922_v37 }
 0xe59   : > { %1757 = vadd.xlane.f32.xlu0 %v1756_v38  ;;  %v2503_v38 = vld [vmem:[%s3642_s9 + $0x1] ss:$0 sm:$0xff] }
 0xe5b   : > { %v2924_v39 = vpop.eup %2923 }
 0xe5c   : > { %v1753_v41 = vsel %vm675_vm2, %v2924_v39, 0.0  ;;  %v1761_v42 = vpack.c.bf16 %v2924_v39, %v2924_v39 }
 0xe5d   : > { %1748 = vadd.xlane.f32.xlu0 %v1747_v40  ;;  %1754 = vadd.xlane.f32.xlu1 %v1753_v41  ;;  %v2504_v40 = vld [vmem:[%s3643_s10 + $0x1] ss:$0 sm:$0xff] }
 0xe5e   : > { %2757 = vmatmul.mubr.msk.bf16.vlgmr.msra.gmra.mrb[40].mxu0 %vm675_vm2, %v1761_v42  ;;  %2763 = vmatmul.mubr.msk.bf16.vlgmr.msra.gmra.mrb[36].mxu1 %vm675_vm2, %v1762_v43 }
 0xe5f   : > { %2770 = vmatprep.mubr.msk.bf16.mxu0 %vm3021_vm1, %v3020_v10  ;;  %2778 = vmatprep.mubr.msk.bf16.mxu1 %vm3021_vm1, %v3020_v10 }
 0xe60   : > { %2767 = vmatpush3.bf16.msra.mxu0 %v2877_v51  ;;  %v2886_v51 = vld [vmem:[%s3646_s13 + $0x68] sm:$0xff]  }
 0xe61   : > { %2768 = vmatprep.subr.bf16.mxu0 %v3020_v10 }
 0xe64   : > { %2769 = vmatpush3.bf16.msra.mxu0 %v2878_v54  ;;  %v2510_v54 = vld [vmem:[%s3677_s24 + $0x1] ss:$0 sm:$0xff] }
 0xe65   : > { %2782 = vmatprep.subr.bf16.mxu0 %v3020_v10 }
 0xeb8   : > { %v1805_v44 = vpop.f32.mrb[36].mxu0 }
 0xeb9   : > { %v2746_v45 = vpop.f32.mrb[37].mxu0 }
 0xeba   : > { %v1808_v47 = vpop.f32.mrb[38].mxu0  ;;  %v2882_v45 = vld [vmem:[%s3646_s13 + $0x48] sm:$0xff]  }
 0xebb   : > { %v2747_v48 = vpop.f32.mrb[39].mxu0  ;;  %v2883_v47 = vld [vmem:[%s3646_s13 + $0x50] sm:$0xff]  }
 0xebc   : > { %v2884_v48 = vld [vmem:[%s3646_s13 + $0x58] sm:$0xff]  }
 0xee2   : > { %v1752_v50 = vpop.xlane.xlu0 %1751 }
 0xee3   : > { %2925 = vrcp.f32 %v1752_v50  ;;  %v2885_v50 = vld [vmem:[%s3646_s13 + $0x60] sm:$0xff]  }
 0xee6   : > { %v1758_v52 = vpop.xlane.xlu0 %1757 }
 0xee7   : > { %2927 = vrcp.f32 %v1758_v52  ;;  %v2887_v52 = vld [vmem:[%s3646_s13 + $0x70] sm:$0xff]  }
 0xeea   : > { %v1755_v53 = vpop.xlane.xlu1 %1754  ;;  %v1749_v12 = vpop.xlane.xlu0 %1748 }
 0xeeb   : > { %2929 = vrcp.f32 %v1755_v53  ;;  %v2888_v53 = vld [vmem:[%s3646_s13 + $0x78] sm:$0xff]  }
 0xeec   : > { %2931 = vrcp.f32 %v1749_v12 }
 0xeed   : > { %v2926_v55 = vpop.eup %2925 }
 0xef1   : > { %v2928_v61 = vpop.eup %2927 }
 0xef5   : > { %v2930_v62 = vpop.eup %2929 }
 0xef6   : > { %v2932_v13 = vpop.eup %2931 }
 0xef7   : > { %v1959_v15 = vmul.f32 %v2932_v13, %v1805_v44  ;;  %v2881_v44 = vld [vmem:[%s3646_s13 + $0x40] sm:$0xff]  }
 0xf29   : > { %v1853_v56 = vpop.f32.mrb[32].mxu1 }
 0xf2a   : > { %v1960_v57 = vmul.f32 %v2926_v55, %v1853_v56  ;;  %v2752_v58 = vpop.f32.mrb[33].mxu1 }
 0xf2b   : > { %v1856_v59 = vpop.f32.mrb[34].mxu1 }
 0xf2c   : > { %1964 = vrot.lane.b32.xlu1 %v1960_v57, %s3681_s0  ;;  %v2753_v60 = vpop.f32.mrb[35].mxu1 }
 0xf31   : > { %v1901_v63 = vpop.f32.mrb[40].mxu0  ;;  %v1949_v0 = vpop.f32.mrb[36].mxu1 }
 0xf32   : > { %v1961_v1 = vmul.f32 %v2930_v62, %v1901_v63  ;;  %v1962_v3 = vmul.f32 %v2928_v61, %v1949_v0  ;;  %v2758_v4 = vpop.f32.mrb[41].mxu0  ;;  %v2764_v5 = vpop.f32.mrb[37].mxu1 }
 0xf33   : > { %v1904_v6 = vpop.f32.mrb[42].mxu0  ;;  %v1952_v7 = vpop.f32.mrb[38].mxu1  ;;  %v2532_v4 = vld [vmem:[%s3647_s14 + $0x1] ss:$0 sm:$0xff]  ;;  %v2273_v5 = vstv %s2272_s29 }
 0xf34   : > { %v2759_v9 = vpop.f32.mrb[43].mxu0  ;;  %1968 = vrot.lane.b32.xlu0 %v1961_v1, %s3682_s28  ;;  %1972 = vrot.lane.b32.xlu1 %v1962_v3, %s3683_s30  ;;  %v2765_v11 = vpop.f32.mrb[39].mxu1  ;;  %vm2274_vm7 = vcmp.eq.s32.totalorder %v3260_v46, %v2273_v5  ;;  %s544_s30 = sand.u32 1, %s3009_s1   ;;  %s2957_s28 = sshll.u32 %s3031_s12, 4  ;;  %s2958_s28 = int_to_ptr.vmem [resolvable:$false] %s2957_s28 }
 0xf35   : > { %s545_s25 = scalar_lea.vmem [#allocation4], %s544_s30  ;;  %s2365_s29 = scalar_lea.sflag [#allocation5], %s544_s30 }
 0xf36   : > { %s2377_s22 = sshll.u32 %s545_s25, 4  ;;  %s2959_s3 = scalar_lea.vmem %s2958_s28, 32  ;;  %s3593_s22 = int_to_ptr.vmem [resolvable:$true] %s2377_s22 }
 0xf37   : > { %s2953_s0 = scalar_lea.vmem %s3593_s22, 16  ;;  %p2960_p5 = scmp.lt.s32.totalorder %s3593_s22, %s2958_s28 }
 0xf38   : > { %p2954_p2 = scmp.ne.s32.totalorder %s3593_s22, %s2953_s0  ;;  %p2961_p6 = scmp.lt.s32.totalorder %s2959_s3, %s2953_s0 }
 0xf3a   : > { %p2955_p3 = pnand %p2954_p2, %p3168_p10  ;;  %p2962_p7 = por %p2961_p6, %p2960_p5 }
 0xf3c   : > { %p2956_p4 = pneg %p2955_p3 }
 0xf3e   : > { %p2963_p8 = pnand %p2962_p7, %p2956_p4 }
 0xf9e   : > { %v1965_v14 = vpop.permute.xlu1 %1964 }
 0xf9f   : > { %v1975_v16 = vsel %vm675_vm2, %v1959_v15, %v1965_v14 }
 0xfa6   : > { %v1969_v17 = vpop.permute.xlu0 %1968  ;;  %v1973_v18 = vpop.permute.xlu1 %1972 }
 0xfa7   : > { %v1976_v19 = vsel %vm1123_vm5, %v1975_v16, %v1969_v17 }
 0xfa8   : > { %v1977_v49 = vsel %vm1125_vm6, %v1976_v19, %v1973_v18 }
 0xfa9   : > { %v1978_v20 = vpack.c.bf16 %v1977_v49, %v1977_v49 }
 0xfab   : > { %2771 = vmatmul.mubr.msk.bf16.vlgmr.msra.gmra.mrb[44].mxu0 %vm562_vm0, %v1978_v20 }
 0xfac   : > { %2798 = vmatprep.mubr.msk.bf16.mxu0 %vm3021_vm1, %v3020_v10  ;;  %2783 = vmatpush3.bf16.msra.mxu0 %v2881_v44 }
 0xfad   : > { %2784 = vmatprep.subr.bf16.mxu0 %v3020_v10 }
 0xfb0   : > { %2785 = vmatpush3.bf16.msra.mxu0 %v2882_v45 }
 0xfb1   : > { %2786 = vmatprep.subr.bf16.mxu0 %v3020_v10 }
 0xfb4   : > { %2787 = vmatpush3.bf16.msra.mxu0 %v2883_v47 }
 0xfb5   : > { %2788 = vmatprep.subr.bf16.mxu0 %v3020_v10 }
 0xfb8   : > { %2789 = vmatpush3.bf16.msra.mxu0 %v2884_v48 }
 0xfb9   : > { %2790 = vmatprep.subr.bf16.mxu0 %v3020_v10 }
 0xfbc   : > { %2791 = vmatpush3.bf16.msra.mxu0 %v2885_v50 }
 0xfbd   : > { %2792 = vmatprep.subr.bf16.mxu0 %v3020_v10 }
 0xfc0   : > { %2793 = vmatpush3.bf16.msra.mxu0 %v2886_v51 }
 0xfc1   : > { %2794 = vmatprep.subr.bf16.mxu0 %v3020_v10 }
 0xfc4   : > { %2795 = vmatpush3.bf16.msra.mxu0 %v2887_v52 }
 0xfc5   : > { %2796 = vmatprep.subr.bf16.mxu0 %v3020_v10 }
 0xfc8   : > { %2797 = vmatpush3.bf16.msra.mxu0 %v2888_v53 }
0x107e   : > { %v2033_v21 = vpop.f32.mrb[44].mxu0 }
0x107f   : > { %v2039_v23 = vadd.f32 %v2033_v21, %v3386_v8  ;;  %v2772_v24 = vpop.f32.mrb[45].mxu0  ;;  %v2879_v8 = vld [vmem:[%s3644_s11 + $0x10] sm:$0xff]  }
0x1080   : > { %v2036_v25 = vpop.f32.mrb[46].mxu0  ;;  %2775 = vmatpush3.bf16.msra.mxu1 %v2879_v8  ;;  %v2286_v8 = vld [vmem:[%s3649_s16] sm:$0x1] }
0x1081   : > { %v3506_v26 = vadd.f32 %v2500_v22, %v2039_v23  ;;  %v2773_v27 = vpop.f32.mrb[47].mxu0  ;;  %2776 = vmatprep.subr.bf16.mxu1 %v3020_v10 }
0x1082   : > { %v2890_v27 = vld [vmem:[%s3650_s17 + $0x8] sm:$0xff]  }
0x1083   : > { %v2053_v28 = vsel %vm562_vm0, %v3506_v26, 0.0 }
0x1084   : > { %2054 = vadd.xlane.f32.xlu1 %v2053_v28  ;;  %2777 = vmatpush3.bf16.msra.mxu1 %v2880_v33 }
0x1085   : > { %2802 = vmatprep.subr.bf16.mxu1 %v3020_v10 }
0x1111   : > { %v2055_v29 = vpop.xlane.xlu1 %2054 }
0x1112   : > { %v2056_v30 = vmul.f32 0.03125, %v2055_v29 }
0x1114   : > { %v2057_v31 = vsub.f32 %v3506_v26, %v2056_v30 }
0x1116   : > { %v2058_v2 = vmul.f32 %v2057_v31, %v2057_v31 }
0x1118   : > { %v2059_v32 = vsel %vm562_vm0, %v2058_v2, 0.0  ;;  %v2285_v2 = vld [vmem:[%s3648_s15] sm:$0x1] }
0x1119   : > { %2060 = vadd.xlane.f32.xlu0 %v2059_v32 }
0x11a6   : > { %v2061_v34 = vpop.xlane.xlu0 %2060 }
0x11a7   : > { %v2062_v35 = vmul.f32 0.03125, %v2061_v34 }
0x11a9   : > { %v2063_v36 = vadd.f32 1e-05, %v2062_v35 }
0x11ab   : > { %2933 = vrsqrt.f32 %v2063_v36 }
0x11b5   : > { %v2934_v37 = vpop.eup %2933 }
0x11b6   : > { %v2065_v39 = vmul.f32 %v2934_v37, %v2057_v31 }
0x11b8   : > { %v2072_v41 = vmul.f32 %v2503_v38, %v2065_v39 }
0x11ba   : > { %v2079_v42 = vadd.f32 %v2504_v40, %v2072_v41 }
0x11bc   : > { %v2080_v43 = vpack.c.bf16 %v2079_v42, %v2079_v42 }
0x11be   : > { %2779 = vmatmul.mubr.msk.bf16.vlgmr.msra.gmra.mrb[40].mxu1 %vm562_vm0, %v2080_v43 }
0x11bf   : > { %2806 = vmatprep.mubr.msk.bf16.mxu1 %vm3021_vm1, %v3020_v10 }
0x1291   : > { %v2143_v55 = vpop.f32.mrb[40].mxu1 }
0x1292   : > { %v2144_v56 = vadd.f32 %v2510_v54, %v2143_v55  ;;  %v2780_v57 = vpop.f32.mrb[41].mxu1 }
0x1293   : > { %v2146_v58 = vpop.f32.mrb[42].mxu1 }
0x1294   : > { %v2514_v59 = vmul.f32 -1.702, %v2144_v56  ;;  %v2781_v60 = vpop.f32.mrb[43].mxu1 }
0x1296   : > { %v2151_v61 = vmul.f32 1.442695, %v2514_v59 }
0x1298   : > { %2935 = vpow2.f32 %v2151_v61 }
0x12a2   : > { %v2936_v62 = vpop.eup %2935 }
0x12a3   : > { %v2153_v63 = vadd.f32 1.0, %v2936_v62 }
0x12a5   : > { %2937 = vrcp.f32 %v2153_v63 }
0x12af   : > { %v2938_v0 = vpop.eup %2937 }
0x12b0   : > { %v2156_v1 = vmul.f32 %v2938_v0, %v2144_v56 }
0x12b2   : > { %v2157_v3 = vpack.c.bf16 %v2156_v1, %v2156_v1 }
0x12b4   : > { %2799 = vmatmul.mubr.bf16.vlgmr.msra.gmra.mrb[48].mxu0 %v2157_v3 }
0x1387   : > { %v2265_v6 = vpop.f32.mrb[48].mxu0 }
0x1388   : > { %v2266_v7 = vadd.f32 %v2532_v4, %v2265_v6  ;;  %v2800_v9 = vpop.f32.mrb[49].mxu0 }
0x1389   : > { %v2268_v11 = vpop.f32.mrb[50].mxu0 }
0x138a   : > { %v2271_v12 = vadd.f32 %v2266_v7, %v3506_v26  ;;  %v2801_v13 = vpop.f32.mrb[51].mxu0  ;;  %v2889_v26 = vld [vmem:[%s3650_s17] sm:$0xff]  }
0x138b   : > { %2803 = vmatpush3.bf16.msra.mxu1 %v2889_v26 }
0x138c   : > { %v2277_v14 = vsel %vm2274_vm7, %v2271_v12, 0.0  ;;  %2804 = vmatprep.subr.bf16.mxu1 %v3020_v10 }
0x138d   : > { %v2278_v15 = vsel %vm562_vm0, %v2277_v14, 0.0 }
0x138e   : > { %v2279_v16 = vrot.slane %v2278_v15, 4 }
0x138f   : > { %2805 = vmatpush3.bf16.msra.mxu1 %v2890_v27 }
0x1390   : > { %v2280_v17 = vadd.f32 %v2279_v16, %v2278_v15 }
0x1392   : > { %v2281_v18 = vrot.slane %v2280_v17, 2 }
0x1394   : > { %v2282_v19 = vadd.f32 %v2281_v18, %v2280_v17 }
0x1396   : > { %v2283_v49 = vrot.slane %v2282_v19, 1 }
0x1398   : > { %v2284_v20 = vadd.f32 %v2283_v49, %v2282_v19 }
0x139a   : > { %v2287_v21 = vsel %vm562_vm0, %v2284_v20, 0.0 }
0x139b   : > { %2288 = vadd.xlane.f32.xlu0 %v2287_v21 }
0x1428   : > { %v2289_v22 = vpop.xlane.xlu0 %2288 }
0x1429   : > { %v2290_v23 = vmul.f32 0.03125, %v2289_v22 }
0x142b   : > { %v2291_v24 = vsub.f32 %v2284_v20, %v2290_v23 }
0x142d   : > { %v2292_v46 = vmul.f32 %v2291_v24, %v2291_v24 }
0x142f   : > { %v2293_v25 = vsel %vm562_vm0, %v2292_v46, 0.0 }
0x1430   : > { %2294 = vadd.xlane.f32.xlu1 %v2293_v25 }
0x14bd   : > { %v2295_v28 = vpop.xlane.xlu1 %2294 }
0x14be   : > { %v2296_v29 = vmul.f32 0.03125, %v2295_v28 }
0x14c0   : > { %v2297_v30 = vadd.f32 1e-05, %v2296_v29 }
0x14c2   : > { %2939 = vrsqrt.f32 %v2297_v30 }
0x14cc   : > { %v2940_v31 = vpop.eup %2939 }
0x14cd   : > { %v2299_v32 = vmul.f32 %v2940_v31, %v2291_v24 }
0x14cf   : > { %v2300_v33 = vmul.f32 %v2299_v32, %v2285_v2 }
0x14d1   : > { %v2301_v34 = vadd.f32 %v2300_v33, %v2286_v8 }
0x14d3   : > { %v2302_v35 = vpack.c.bf16 %v2301_v34, %v2301_v34 }
0x14d5   : > { %2807 = vmatmul.mubr.msk.bf16.vlgmr.msra.gmra.mrb[44].mxu1 %vm562_vm0, %v2302_v35 }
0x15a8   : > { %v2356_v10 = vpop.f32.mrb[44].mxu1 }
0x15a9   : > { %2363 = vst.msk [vmem:[%s545_s25] sm:$0x1] %vm2362_vm8, %v2356_v10  ;;  %v2808_v36 = vpop.f32.mrb[45].mxu1 }
0x15aa   : > { %v2359_v37 = vpop.f32.mrb[46].mxu1 }
0x15ab   : > { %2966 = shalt.err (!%p2963_p8)
}
0x15ac   : > { %s2967_s4 = scalar_lea.hbm %s3591_s23, 16  ;;  %s2971_s25 = scalar_lea.hbm %s3651_s18, 32 }
0x15ad   : > { %p2968_p9 = scmp.ne.s32.totalorder %s3591_s23, %s2967_s4  ;;  %p2972_p0 = scmp.lt.u32.totalorder %s3591_s23, %s3651_s18 }
0x15ae   : > { %p2973_p1 = scmp.lt.u32.totalorder %s2971_s25, %s2967_s4  ;;  %p2975_p3 = scmp.lt.u32.totalorder %s2967_s4, %s3591_s23 }
0x15af   : > { %p2969_p12 = pnand %p2968_p9, %p3168_p10 }
0x15b0   : > { %p2974_p2 = por %p2973_p1, %p2972_p0 }
0x15b1   : > { %p2970_p13 = pneg %p2969_p12 }
0x15b2   : > { %p2976_p4 = por %p2975_p3, %p2974_p2 }
0x15b4   : > { %p2977_p5 = pnand %p2976_p4, %p2970_p13 }
0x15b6   : > { %2980 = shalt.err (!%p2977_p5)
}
0x15b7   : > { %2810 = dma.vmem_to_hbm [thread:$0]  (%p3168_p10), %s3593_s22, 16, %s3591_s23, %s2365_s29   ;;  %v2809_v38 = vpop.f32.mrb[47].mxu1 }
0x15b8 PF: > { %p2816_p6 = scmp.ge.s32.totalorder %s3017_s21, 2  ;;  %s2389_s0 = sand.u32 1, %s3005_s19  }
0x15b9   : > { %s2390_s3 = scalar_lea.sflag [#allocation5], %s2389_s0 }
0x15ba   : > { %p2813_p7 = pnand %p2816_p6, %p3172_p11 }
0x15bc   : > { %3000 = dma.done.wait (!%p2813_p7), %s2390_s3, 16  }
0x15bd   : > { %3002 = vsyncadd (!%p2813_p7), %s2390_s3, 4294967280  ;;  %s3684_s4 = sld [smem:[#allocation8_spill]]  ;;  %s3685_s20 = sld [smem:[#allocation9_spill]] }
0x15be   : > { %p34_p8 = scmp.ge.s32.totalorder %s3155_s2, 4   ;;  %s3686_s19 = smov %s3009_s1 }
0x15bf   : > { %s3688_s21 = smov %s3155_s2 }
0x15c0   :  { %36 = sbr.rel (!%p34_p8) target bundleno = 25 (0x19), region = 135 }
0x15c3   : > { %s3687_s1 = smov %s3684_s4 }
0x15c7   :  { %2394 = vsyncpa [#allocation5], 1 }
0x15c8   :  { %2396 = vsyncpa [#allocation5 + $0x1], 1 }

</bundles_post_ra>
